<compile_context>
chip_gen: v6e
topology: v6e:2x2x1
jax: 0.10.0
libtpu: 0.0.40
codegen_flags: <defaults>
</compile_context>

<pallas_src>
import math

import jax
import jax.numpy as jnp
from jax import lax
from jax.experimental import pallas as pl
from jax.experimental.pallas import tpu as pltpu

# ---- small config (consistent with the module, scaled down) ----
NUM_CLASS = 10
D_MODEL = 32
DIM_FF = 32
NHEAD = 4
NUM_LAYERS = 2
SEQ_LEN = 8
BATCH = 2

HEAD_DIM = D_MODEL // NHEAD          # 8
VOCAB = NUM_CLASS + 1                # 11
VOCAB_PAD = 16                       # vocab padded (zero rows) to a sublane multiple
CLASS_PAD = 128                      # lane-dense decoder output; sliced back to 10
N_TOKENS = SEQ_LEN * BATCH           # 16 (row n = s*B + b, seq-first)
HN = NHEAD * N_TOKENS                # 64 (head-stacked row r = h*N + n)
ATTN_COLS = 2 * HEAD_DIM + D_MODEL   # 48  = [q | k | v@Wo]
SLAB48_W = ATTN_COLS                 # lane width of the parameter slab

# --- slab48 row layout (all offsets multiples of 8) ---
EMB_OFF = 0                                   # [VOCAB_PAD, D]  (sqrt(d_model) folded in)
PE_OFF = EMB_OFF + VOCAB_PAD                  # [N_TOKENS, D]
LAYER0_OFF = PE_OFF + N_TOKENS                # per-layer regions follow
WATTN_OFF = 0                                 # [H*D, 48]  stacked per-head q|k|v@Wo
BATTN_OFF = WATTN_OFF + NHEAD * D_MODEL       # [H*N, 48]  fused bias rows
W1_OFF = BATTN_OFF + HN                       # [D, DIM_FF]
W2_OFF = W1_OFF + D_MODEL                     # [DIM_FF, D]
VEC_OFF = W2_OFF + DIM_FF                     # [8, D]: bo, b1, b2, g1, be1, g2, be2, 0
LAYER_ROWS = VEC_OFF + 8                      # 264
SLAB48_ROWS = LAYER0_OFF + NUM_LAYERS * LAYER_ROWS   # 560

# --- slab128 row layout ---
BD_OFF = 0                                    # [64, 128] block-diag 0/1 mask for X_bd
DECW_OFF = BD_OFF + HN                        # [D, 128] decoder weight (lane-padded)
DECB_OFF = DECW_OFF + D_MODEL                 # [8, 128] decoder bias (row 0)
AMASK_OFF = DECB_OFF + 8                      # [64, 128] additive attn mask (lanes 0:64)
SLAB128_ROWS = AMASK_OFF + HN                 # 168


def _layer_norm(x, g, b, eps=1e-5):
    mu = jnp.mean(x, axis=-1, keepdims=True)
    var = jnp.mean((x - mu) ** 2, axis=-1, keepdims=True)
    return (x - mu) * lax.rsqrt(var + eps) * g + b


def fused_forward_kernel(ids_ref, slab48_ref, slab128_ref, o_ref):
    """Whole MTCN_LM forward for the full batch in a single invocation.

    Activations are [N_TOKENS, D] in seq-first row order (row n = s*B + b).
    Attention is head-and-batch fused: head-stacked rows r = h*N + n, one
    [64,64] masked softmax per layer, per-head out-projection pre-folded
    into the V columns of the stacked weight.
    """
    n, d, hd = N_TOKENS, D_MODEL, HEAD_DIM

    # Embedding gather fused as a one-hot matmul (vocab is tiny); *sqrt(d_model)
    # is pre-folded into the table; positional encoding is pre-expanded.
    ids = ids_ref[...]                                                  # [N, 1] int32
    onehot = (ids == lax.broadcasted_iota(jnp.int32, (n, VOCAB_PAD), 1)
              ).astype(jnp.float32)                                     # [N, Vpad]
    emb = slab48_ref[EMB_OFF:EMB_OFF + VOCAB_PAD, 0:d]
    pe = slab48_ref[PE_OFF:PE_OFF + n, 0:d]
    x = jnp.dot(onehot, emb, preferred_element_type=jnp.float32) + pe   # [N, D]

    bd_mask = slab128_ref[BD_OFF:BD_OFF + HN, :]                        # [64, 128] 0/1
    amask = slab128_ref[AMASK_OFF:AMASK_OFF + HN, 0:HN]                 # [64, 64] 0/-1e30

    for l in range(NUM_LAYERS):
        o = LAYER0_OFF + l * LAYER_ROWS
        w_attn = slab48_ref[o + WATTN_OFF:o + WATTN_OFF + NHEAD * d, :]  # [128, 48]
        b_attn = slab48_ref[o + BATTN_OFF:o + BATTN_OFF + HN, :]         # [64, 48]
        w1 = slab48_ref[o + W1_OFF:o + W1_OFF + d, 0:DIM_FF]             # [32, 32]
        w2 = slab48_ref[o + W2_OFF:o + W2_OFF + DIM_FF, 0:d]             # [32, 32]
        vec = slab48_ref[o + VEC_OFF:o + VEC_OFF + 8, 0:d]               # [8, 32]
        b_out, b1, b2 = vec[0:1, :], vec[1:2, :], vec[2:3, :]
        g1, be1, g2, be2 = vec[3:4, :], vec[4:5, :], vec[5:6, :], vec[6:7, :]

        # Head-stacked block-diagonal activations: X_bd[h*N + t, h*D + :] = x[t, :].
        xr = jnp.concatenate([x] * NHEAD, axis=0)                        # [64, 32]
        x_bd = jnp.concatenate([xr] * NHEAD, axis=1) * bd_mask           # [64, 128]

        # ONE fused projection for all heads: q | k | (v @ Wo).  1/sqrt(hd) and all
        # projection biases are pre-folded into w_attn / b_attn.
        a_s = jnp.dot(x_bd, w_attn, preferred_element_type=jnp.float32) + b_attn
        q = a_s[:, 0:hd]                                                 # [64, 8]
        k = a_s[:, hd:2 * hd]                                            # [64, 8]
        vo = a_s[:, 2 * hd:2 * hd + d]                                   # [64, 32]

        # ONE score matmul + ONE masked softmax + ONE P@(V@Wo) for all heads/batch.
        s = lax.dot_general(q, k, (((1,), (1,)), ((), ())),
                            preferred_element_type=jnp.float32)          # [64, 64]
        s = s + amask
        s = s - jnp.max(s, axis=-1, keepdims=True)
        p = jnp.exp(s)
        p = p * pl.reciprocal(jnp.sum(p, axis=-1, keepdims=True), approx=True)
        c = jnp.dot(p, vo, preferred_element_type=jnp.float32)           # [64, 32]

        # Head sum (out-projection already folded in) + output bias.
        attn = b_out
        for h in range(NHEAD):
            attn = attn + c[h * n:(h + 1) * n, :]                        # [16, 32]

        # Post-norm residual blocks (dropout = identity in eval mode).
        x = _layer_norm(x + attn, g1, be1)
        h1 = jnp.maximum(
            jnp.dot(x, w1, preferred_element_type=jnp.float32) + b1, 0.0)
        ff = jnp.dot(h1, w2, preferred_element_type=jnp.float32) + b2
        x = _layer_norm(x + ff, g2, be2)

    # Decoder: Linear(d_model -> num_class), lane-padded to CLASS_PAD (dense store).
    dec_w = slab128_ref[DECW_OFF:DECW_OFF + d, :]                        # [32, 128]
    dec_b = slab128_ref[DECB_OFF:DECB_OFF + 1, :]                        # [1, 128]
    o_ref[...] = (jnp.dot(x, dec_w, preferred_element_type=jnp.float32)
                  + dec_b).astype(o_ref.dtype)


# ---------------------------------------------------------------------------
# Parameter construction: ALL head splitting / folding / packing done at init.
# ---------------------------------------------------------------------------
def make_positional_encoding(max_len, d_model):
    position = jnp.arange(max_len, dtype=jnp.float32)[:, None]
    div_term = jnp.exp(jnp.arange(0, d_model, 2, dtype=jnp.float32)
                       * (-math.log(10000.0) / d_model))
    pe = jnp.zeros((max_len, d_model), dtype=jnp.float32)
    pe = pe.at[:, 0::2].set(jnp.sin(position * div_term))
    pe = pe.at[:, 1::2].set(jnp.cos(position * div_term))
    return pe


def _pad_lanes(a, width):
    r, c = a.shape
    return jnp.zeros((r, width), jnp.float32).at[:, :c].set(a)


def init_params(key):
    assert DIM_FF == D_MODEL, "vec-block packing assumes DIM_FF == D_MODEL"
    k_emb, k_dec, *k_layers = jax.random.split(key, 2 + NUM_LAYERS)
    s = 0.05
    scale = 1.0 / math.sqrt(HEAD_DIM)

    # Embedding table with sqrt(d_model) folded in; padded to VOCAB_PAD rows.
    emb = jax.random.normal(k_emb, (VOCAB, D_MODEL), jnp.float32)
    emb_scaled = (jnp.zeros((VOCAB_PAD, D_MODEL), jnp.float32)
                  .at[:VOCAB].set(emb)) * math.sqrt(D_MODEL)

    # Positional encoding pre-expanded to the seq-first flattened order (n = s*B + b).
    pe = make_positional_encoding(5000, D_MODEL)[:SEQ_LEN]
    pe_sb = jnp.broadcast_to(pe[:, None, :],
                             (SEQ_LEN, BATCH, D_MODEL)).reshape(N_TOKENS, D_MODEL)

    layer_slabs = []
    for kl in k_layers:
        ks = jax.random.split(kl, 6)
        wq = jax.random.normal(ks[0], (D_MODEL, D_MODEL), jnp.float32) * s
        wk = jax.random.normal(ks[1], (D_MODEL, D_MODEL), jnp.float32) * s
        wv = jax.random.normal(ks[2], (D_MODEL, D_MODEL), jnp.float32) * s
        wo = jax.random.normal(ks[3], (D_MODEL, D_MODEL), jnp.float32) * s
        w1 = jax.random.normal(ks[4], (D_MODEL, DIM_FF), jnp.float32) * s
        w2 = jax.random.normal(ks[5], (DIM_FF, D_MODEL), jnp.float32) * s
        bq = jnp.zeros((D_MODEL,)); bk = jnp.zeros((D_MODEL,)); bv = jnp.zeros((D_MODEL,))
        bo = jnp.zeros((D_MODEL,)); b1 = jnp.zeros((DIM_FF,)); b2 = jnp.zeros((D_MODEL,))
        g1 = jnp.ones((D_MODEL,)); be1 = jnp.zeros((D_MODEL,))
        g2 = jnp.ones((D_MODEL,)); be2 = jnp.zeros((D_MODEL,))

        # Vertically stacked per-head weight [H*D, 48] = [q*scale | k | v@Wo] and
        # the matching per-row fused bias [H*N, 48].
        w_attn = jnp.zeros((NHEAD * D_MODEL, ATTN_COLS), jnp.float32)
        b_attn = jnp.zeros((HN, ATTN_COLS), jnp.float32)
        for h in range(NHEAD):
            hs = slice(h * HEAD_DIM, (h + 1) * HEAD_DIM)
            rows = slice(h * D_MODEL, (h + 1) * D_MODEL)
            wo_h = wo[hs, :]                                   # [hd, D]
            w_attn = w_attn.at[rows, 0:HEAD_DIM].set(wq[:, hs] * scale)
            w_attn = w_attn.at[rows, HEAD_DIM:2 * HEAD_DIM].set(wk[:, hs])
            w_attn = w_attn.at[rows, 2 * HEAD_DIM:].set(wv[:, hs] @ wo_h)
            brow = jnp.concatenate([bq[hs] * scale, bk[hs], bv[hs] @ wo_h])
            b_attn = b_attn.at[h * N_TOKENS:(h + 1) * N_TOKENS, :].set(
                jnp.broadcast_to(brow[None, :], (N_TOKENS, ATTN_COLS)))

        vec = jnp.stack([bo, b1, b2, g1, be1, g2, be2,
                         jnp.zeros((D_MODEL,), jnp.float32)], axis=0)   # [8, 32]

        layer_slabs.append(jnp.concatenate([
            w_attn,                            # [128, 48]
            b_attn,                            # [64, 48]
            _pad_lanes(w1, SLAB48_W),          # [32, 48]
            _pad_lanes(w2, SLAB48_W),          # [32, 48]
            _pad_lanes(vec, SLAB48_W),         # [8, 48]
        ], axis=0))

    slab48 = jnp.concatenate([_pad_lanes(emb_scaled, SLAB48_W),
                              _pad_lanes(pe_sb, SLAB48_W),
                              *layer_slabs], axis=0)
    assert slab48.shape == (SLAB48_ROWS, SLAB48_W)

    # Block-diagonal 0/1 mask for building X_bd: rows h*N+n, cols h'*D+d, 1 iff h==h'.
    rh = jnp.arange(HN) // N_TOKENS
    ch = jnp.arange(NHEAD * D_MODEL) // D_MODEL
    bd_mask = (rh[:, None] == ch[None, :]).astype(jnp.float32)          # [64, 128]

    # Additive attention mask: same head AND same batch element -> 0, else -1e30.
    r = jnp.arange(HN)
    head = r // N_TOKENS
    batch = (r % N_TOKENS) % BATCH
    ok = (head[:, None] == head[None, :]) & (batch[:, None] == batch[None, :])
    amask = jnp.where(ok, 0.0, -1e30).astype(jnp.float32)               # [64, 64]

    dec_w = jax.random.normal(k_dec, (D_MODEL, NUM_CLASS), jnp.float32) * s
    dec_w_pad = jnp.zeros((D_MODEL, CLASS_PAD), jnp.float32).at[:, :NUM_CLASS].set(dec_w)
    dec_b_blk = jnp.zeros((8, CLASS_PAD), jnp.float32)                  # row 0 = bias (0)

    slab128 = jnp.concatenate([bd_mask, dec_w_pad, dec_b_blk,
                               _pad_lanes(amask, CLASS_PAD)], axis=0)
    assert slab128.shape == (SLAB128_ROWS, CLASS_PAD)

    return {'slab48': slab48, 'slab128': slab128}


@jax.jit
def mtcn_lm_forward(params, verb_input):
    """verb_input: [S, B] int32 token ids (noun_input=None path) -> [S, B, num_class].

    Shapes must match SEQ_LEN/BATCH used at init (PE / masks are pre-expanded).
    """
    S, B = verb_input.shape
    assert (S, B) == (SEQ_LEN, BATCH)
    ids = verb_input.reshape(S * B, 1).astype(jnp.int32)                # seq-first flatten

    out = pl.pallas_call(
        fused_forward_kernel,
        out_shape=jax.ShapeDtypeStruct((S * B, CLASS_PAD), jnp.float32),
        in_specs=[pl.BlockSpec(memory_space=pltpu.MemorySpace.VMEM)] * 3,
        out_specs=pl.BlockSpec(memory_space=pltpu.MemorySpace.VMEM),
    )(ids, params['slab48'], params['slab128'])

    return out[:, :NUM_CLASS].reshape(S, B, NUM_CLASS)                  # [S, B, num_class]


if __name__ == "__main__":
    key = jax.random.PRNGKey(0)
    kp, kx = jax.random.split(key)
    params = init_params(kp)
    verb_input = jax.random.randint(kx, (SEQ_LEN, BATCH), 0, NUM_CLASS + 1,
                                    dtype=jnp.int32)
    out = mtcn_lm_forward(params, verb_input)
    jax.block_until_ready(out)
    assert out.shape == (SEQ_LEN, BATCH, NUM_CLASS)
    assert out.dtype == jnp.float32
    print("KERNEL_OK")
</pallas_src>

<mosaic_0001>
module attributes {stable_mosaic.version = 11 : i64} {
  func.func @fused_forward_kernel(%arg0: memref<16x1xi32, #tpu.memory_space<vmem>>, %arg1: memref<560x48xf32, #tpu.memory_space<vmem>>, %arg2: memref<168x128xf32, #tpu.memory_space<vmem>>, %arg3: memref<16x128xf32, #tpu.memory_space<vmem>>) attributes {dimension_semantics = [], scalar_prefetch = 0 : i64, scratch_operands = 0 : i64, tpu.core_type = #tpu.core_type<tc>} {
    %c0 = arith.constant 0 : index
    %c0_0 = arith.constant 0 : index
    %0 = vector.load %arg0[%c0, %c0_0] : memref<16x1xi32, #tpu.memory_space<vmem>>, vector<16x1xi32>
    %1 = tpu.iota {dimensions = array<i32: 1>} : vector<16x16xi32>
    %2 = vector.broadcast %0 : vector<16x1xi32> to vector<16x16xi32>
    %3 = arith.cmpi eq, %2, %1 : vector<16x16xi32>
    %4 = arith.extui %3 : vector<16x16xi1> to vector<16x16xi32>
    %5 = arith.sitofp %4 : vector<16x16xi32> to vector<16x16xf32>
    %c0_1 = arith.constant 0 : index
    %c0_2 = arith.constant 0 : index
    %6 = vector.load %arg1[%c0_1, %c0_2] : memref<560x48xf32, #tpu.memory_space<vmem>>, vector<16x32xf32>
    %c16 = arith.constant 16 : index
    %c0_3 = arith.constant 0 : index
    %7 = vector.load %arg1[%c16, %c0_3] : memref<560x48xf32, #tpu.memory_space<vmem>>, vector<16x32xf32>
    %cst = arith.constant dense<0.000000e+00> : vector<16x32xf32>
    %8 = tpu.matmul %5, %6, %cst {dimension_numbers = #tpu.dot_dimension_numbers<[1], [0], [0], [1], [0, 0, 1, 1], [], []>} : vector<16x16xf32>, vector<16x32xf32>, vector<16x32xf32> -> vector<16x32xf32>
    %9 = arith.addf %8, %7 : vector<16x32xf32>
    %c0_4 = arith.constant 0 : index
    %c0_5 = arith.constant 0 : index
    %10 = vector.load %arg2[%c0_4, %c0_5] : memref<168x128xf32, #tpu.memory_space<vmem>>, vector<64x128xf32>
    %c104 = arith.constant 104 : index
    %c0_6 = arith.constant 0 : index
    %11 = vector.load %arg2[%c104, %c0_6] : memref<168x128xf32, #tpu.memory_space<vmem>>, vector<64x64xf32>
    %c32 = arith.constant 32 : index
    %c0_7 = arith.constant 0 : index
    %12 = vector.load %arg1[%c32, %c0_7] : memref<560x48xf32, #tpu.memory_space<vmem>>, vector<128x48xf32>
    %c160 = arith.constant 160 : index
    %c0_8 = arith.constant 0 : index
    %13 = vector.load %arg1[%c160, %c0_8] : memref<560x48xf32, #tpu.memory_space<vmem>>, vector<64x48xf32>
    %c224 = arith.constant 224 : index
    %c0_9 = arith.constant 0 : index
    %14 = vector.load %arg1[%c224, %c0_9] : memref<560x48xf32, #tpu.memory_space<vmem>>, vector<32x32xf32>
    %c256 = arith.constant 256 : index
    %c0_10 = arith.constant 0 : index
    %15 = vector.load %arg1[%c256, %c0_10] : memref<560x48xf32, #tpu.memory_space<vmem>>, vector<32x32xf32>
    %c288 = arith.constant 288 : index
    %c0_11 = arith.constant 0 : index
    %16 = vector.load %arg1[%c288, %c0_11] : memref<560x48xf32, #tpu.memory_space<vmem>>, vector<8x32xf32>
    %17 = vector.extract_strided_slice %16 {offsets = [0, 0], sizes = [1, 32], strides = [1, 1]} : vector<8x32xf32> to vector<1x32xf32>
    %18 = vector.extract_strided_slice %16 {offsets = [1, 0], sizes = [1, 32], strides = [1, 1]} : vector<8x32xf32> to vector<1x32xf32>
    %19 = vector.extract_strided_slice %16 {offsets = [2, 0], sizes = [1, 32], strides = [1, 1]} : vector<8x32xf32> to vector<1x32xf32>
    %20 = vector.extract_strided_slice %16 {offsets = [3, 0], sizes = [1, 32], strides = [1, 1]} : vector<8x32xf32> to vector<1x32xf32>
    %21 = vector.extract_strided_slice %16 {offsets = [4, 0], sizes = [1, 32], strides = [1, 1]} : vector<8x32xf32> to vector<1x32xf32>
    %22 = vector.extract_strided_slice %16 {offsets = [5, 0], sizes = [1, 32], strides = [1, 1]} : vector<8x32xf32> to vector<1x32xf32>
    %23 = vector.extract_strided_slice %16 {offsets = [6, 0], sizes = [1, 32], strides = [1, 1]} : vector<8x32xf32> to vector<1x32xf32>
    %24 = tpu.concatenate %9, %9, %9, %9 in 0 : vector<16x32xf32>, vector<16x32xf32>, vector<16x32xf32>, vector<16x32xf32> -> vector<64x32xf32>
    %25 = tpu.concatenate %24, %24, %24, %24 in 1 : vector<64x32xf32>, vector<64x32xf32>, vector<64x32xf32>, vector<64x32xf32> -> vector<64x128xf32>
    %26 = arith.mulf %25, %10 : vector<64x128xf32>
    %cst_12 = arith.constant dense<0.000000e+00> : vector<64x48xf32>
    %27 = tpu.matmul %26, %12, %cst_12 {dimension_numbers = #tpu.dot_dimension_numbers<[1], [0], [0], [1], [0, 0, 1, 1], [], []>} : vector<64x128xf32>, vector<128x48xf32>, vector<64x48xf32> -> vector<64x48xf32>
    %28 = arith.addf %27, %13 : vector<64x48xf32>
    %29 = vector.extract_strided_slice %28 {offsets = [0, 0], sizes = [64, 8], strides = [1, 1]} : vector<64x48xf32> to vector<64x8xf32>
    %30 = vector.extract_strided_slice %28 {offsets = [0, 8], sizes = [64, 8], strides = [1, 1]} : vector<64x48xf32> to vector<64x8xf32>
    %31 = vector.extract_strided_slice %28 {offsets = [0, 16], sizes = [64, 32], strides = [1, 1]} : vector<64x48xf32> to vector<64x32xf32>
    %cst_13 = arith.constant dense<0.000000e+00> : vector<64x64xf32>
    %32 = tpu.matmul %29, %30, %cst_13 {dimension_numbers = #tpu.dot_dimension_numbers<[1], [1], [0], [0], [0, 0, 1, 0], [], []>} : vector<64x8xf32>, vector<64x8xf32>, vector<64x64xf32> -> vector<64x64xf32>
    %33 = arith.addf %32, %11 : vector<64x64xf32>
    %cst_14 = arith.constant dense<0xFF800000> : vector<64xf32>
    %34 = vector.multi_reduction <maximumf>, %33, %cst_14 [1] : vector<64x64xf32> to vector<64xf32>
    %35 = vector.shape_cast %34 : vector<64xf32> to vector<64x1xf32>
    %36 = vector.broadcast %35 : vector<64x1xf32> to vector<64x64xf32>
    %37 = arith.subf %33, %36 : vector<64x64xf32>
    %38 = math.exp %37 : vector<64x64xf32>
    %cst_15 = arith.constant dense<0.000000e+00> : vector<64xf32>
    %39 = vector.multi_reduction <add>, %38, %cst_15 [1] : vector<64x64xf32> to vector<64xf32>
    %40 = vector.shape_cast %39 : vector<64xf32> to vector<64x1xf32>
    %41 = tpu.reciprocal %40 {approx = true} : vector<64x1xf32> -> vector<64x1xf32>
    %42 = vector.broadcast %41 : vector<64x1xf32> to vector<64x64xf32>
    %43 = arith.mulf %38, %42 : vector<64x64xf32>
    %cst_16 = arith.constant dense<0.000000e+00> : vector<64x32xf32>
    %44 = tpu.matmul %43, %31, %cst_16 {dimension_numbers = #tpu.dot_dimension_numbers<[1], [0], [0], [1], [0, 0, 1, 1], [], []>} : vector<64x64xf32>, vector<64x32xf32>, vector<64x32xf32> -> vector<64x32xf32>
    %45 = vector.extract_strided_slice %44 {offsets = [0, 0], sizes = [16, 32], strides = [1, 1]} : vector<64x32xf32> to vector<16x32xf32>
    %46 = vector.broadcast %17 : vector<1x32xf32> to vector<16x32xf32>
    %47 = arith.addf %46, %45 : vector<16x32xf32>
    %48 = vector.extract_strided_slice %44 {offsets = [16, 0], sizes = [16, 32], strides = [1, 1]} : vector<64x32xf32> to vector<16x32xf32>
    %49 = arith.addf %47, %48 : vector<16x32xf32>
    %50 = vector.extract_strided_slice %44 {offsets = [32, 0], sizes = [16, 32], strides = [1, 1]} : vector<64x32xf32> to vector<16x32xf32>
    %51 = arith.addf %49, %50 : vector<16x32xf32>
    %52 = vector.extract_strided_slice %44 {offsets = [48, 0], sizes = [16, 32], strides = [1, 1]} : vector<64x32xf32> to vector<16x32xf32>
    %53 = arith.addf %51, %52 : vector<16x32xf32>
    %54 = arith.addf %9, %53 : vector<16x32xf32>
    %cst_17 = arith.constant dense<0.000000e+00> : vector<16xf32>
    %55 = vector.multi_reduction <add>, %54, %cst_17 [1] : vector<16x32xf32> to vector<16xf32>
    %56 = vector.shape_cast %55 : vector<16xf32> to vector<16x1xf32>
    %cst_18 = arith.constant 3.200000e+01 : f32
    %57 = vector.broadcast %cst_18 : f32 to vector<16x1xf32>
    %58 = arith.divf %56, %57 : vector<16x1xf32>
    %59 = vector.broadcast %58 : vector<16x1xf32> to vector<16x32xf32>
    %60 = arith.subf %54, %59 : vector<16x32xf32>
    %61 = arith.mulf %60, %60 : vector<16x32xf32>
    %cst_19 = arith.constant dense<0.000000e+00> : vector<16xf32>
    %62 = vector.multi_reduction <add>, %61, %cst_19 [1] : vector<16x32xf32> to vector<16xf32>
    %63 = vector.shape_cast %62 : vector<16xf32> to vector<16x1xf32>
    %cst_20 = arith.constant 3.200000e+01 : f32
    %64 = vector.broadcast %cst_20 : f32 to vector<16x1xf32>
    %65 = arith.divf %63, %64 : vector<16x1xf32>
    %66 = vector.broadcast %58 : vector<16x1xf32> to vector<16x32xf32>
    %67 = arith.subf %54, %66 : vector<16x32xf32>
    %cst_21 = arith.constant 9.99999974E-6 : f32
    %68 = vector.broadcast %cst_21 : f32 to vector<16x1xf32>
    %69 = arith.addf %65, %68 : vector<16x1xf32>
    %70 = math.rsqrt %69 : vector<16x1xf32>
    %71 = vector.broadcast %70 : vector<16x1xf32> to vector<16x32xf32>
    %72 = arith.mulf %67, %71 : vector<16x32xf32>
    %73 = vector.broadcast %20 : vector<1x32xf32> to vector<16x32xf32>
    %74 = arith.mulf %72, %73 : vector<16x32xf32>
    %75 = vector.broadcast %21 : vector<1x32xf32> to vector<16x32xf32>
    %76 = arith.addf %74, %75 : vector<16x32xf32>
    %cst_22 = arith.constant dense<0.000000e+00> : vector<16x32xf32>
    %77 = tpu.matmul %76, %14, %cst_22 {dimension_numbers = #tpu.dot_dimension_numbers<[1], [0], [0], [1], [0, 0, 1, 1], [], []>} : vector<16x32xf32>, vector<32x32xf32>, vector<16x32xf32> -> vector<16x32xf32>
    %78 = vector.broadcast %18 : vector<1x32xf32> to vector<16x32xf32>
    %79 = arith.addf %77, %78 : vector<16x32xf32>
    %cst_23 = arith.constant 0.000000e+00 : f32
    %80 = vector.broadcast %cst_23 : f32 to vector<16x32xf32>
    %81 = arith.maximumf %79, %80 : vector<16x32xf32>
    %cst_24 = arith.constant dense<0.000000e+00> : vector<16x32xf32>
    %82 = tpu.matmul %81, %15, %cst_24 {dimension_numbers = #tpu.dot_dimension_numbers<[1], [0], [0], [1], [0, 0, 1, 1], [], []>} : vector<16x32xf32>, vector<32x32xf32>, vector<16x32xf32> -> vector<16x32xf32>
    %83 = vector.broadcast %19 : vector<1x32xf32> to vector<16x32xf32>
    %84 = arith.addf %82, %83 : vector<16x32xf32>
    %85 = arith.addf %76, %84 : vector<16x32xf32>
    %cst_25 = arith.constant dense<0.000000e+00> : vector<16xf32>
    %86 = vector.multi_reduction <add>, %85, %cst_25 [1] : vector<16x32xf32> to vector<16xf32>
    %87 = vector.shape_cast %86 : vector<16xf32> to vector<16x1xf32>
    %cst_26 = arith.constant 3.200000e+01 : f32
    %88 = vector.broadcast %cst_26 : f32 to vector<16x1xf32>
    %89 = arith.divf %87, %88 : vector<16x1xf32>
    %90 = vector.broadcast %89 : vector<16x1xf32> to vector<16x32xf32>
    %91 = arith.subf %85, %90 : vector<16x32xf32>
    %92 = arith.mulf %91, %91 : vector<16x32xf32>
    %cst_27 = arith.constant dense<0.000000e+00> : vector<16xf32>
    %93 = vector.multi_reduction <add>, %92, %cst_27 [1] : vector<16x32xf32> to vector<16xf32>
    %94 = vector.shape_cast %93 : vector<16xf32> to vector<16x1xf32>
    %cst_28 = arith.constant 3.200000e+01 : f32
    %95 = vector.broadcast %cst_28 : f32 to vector<16x1xf32>
    %96 = arith.divf %94, %95 : vector<16x1xf32>
    %97 = vector.broadcast %89 : vector<16x1xf32> to vector<16x32xf32>
    %98 = arith.subf %85, %97 : vector<16x32xf32>
    %cst_29 = arith.constant 9.99999974E-6 : f32
    %99 = vector.broadcast %cst_29 : f32 to vector<16x1xf32>
    %100 = arith.addf %96, %99 : vector<16x1xf32>
    %101 = math.rsqrt %100 : vector<16x1xf32>
    %102 = vector.broadcast %101 : vector<16x1xf32> to vector<16x32xf32>
    %103 = arith.mulf %98, %102 : vector<16x32xf32>
    %104 = vector.broadcast %22 : vector<1x32xf32> to vector<16x32xf32>
    %105 = arith.mulf %103, %104 : vector<16x32xf32>
    %106 = vector.broadcast %23 : vector<1x32xf32> to vector<16x32xf32>
    %107 = arith.addf %105, %106 : vector<16x32xf32>
    %c296 = arith.constant 296 : index
    %c0_30 = arith.constant 0 : index
    %108 = vector.load %arg1[%c296, %c0_30] : memref<560x48xf32, #tpu.memory_space<vmem>>, vector<128x48xf32>
    %c424 = arith.constant 424 : index
    %c0_31 = arith.constant 0 : index
    %109 = vector.load %arg1[%c424, %c0_31] : memref<560x48xf32, #tpu.memory_space<vmem>>, vector<64x48xf32>
    %c488 = arith.constant 488 : index
    %c0_32 = arith.constant 0 : index
    %110 = vector.load %arg1[%c488, %c0_32] : memref<560x48xf32, #tpu.memory_space<vmem>>, vector<32x32xf32>
    %c520 = arith.constant 520 : index
    %c0_33 = arith.constant 0 : index
    %111 = vector.load %arg1[%c520, %c0_33] : memref<560x48xf32, #tpu.memory_space<vmem>>, vector<32x32xf32>
    %c552 = arith.constant 552 : index
    %c0_34 = arith.constant 0 : index
    %112 = vector.load %arg1[%c552, %c0_34] : memref<560x48xf32, #tpu.memory_space<vmem>>, vector<8x32xf32>
    %113 = vector.extract_strided_slice %112 {offsets = [0, 0], sizes = [1, 32], strides = [1, 1]} : vector<8x32xf32> to vector<1x32xf32>
    %114 = vector.extract_strided_slice %112 {offsets = [1, 0], sizes = [1, 32], strides = [1, 1]} : vector<8x32xf32> to vector<1x32xf32>
    %115 = vector.extract_strided_slice %112 {offsets = [2, 0], sizes = [1, 32], strides = [1, 1]} : vector<8x32xf32> to vector<1x32xf32>
    %116 = vector.extract_strided_slice %112 {offsets = [3, 0], sizes = [1, 32], strides = [1, 1]} : vector<8x32xf32> to vector<1x32xf32>
    %117 = vector.extract_strided_slice %112 {offsets = [4, 0], sizes = [1, 32], strides = [1, 1]} : vector<8x32xf32> to vector<1x32xf32>
    %118 = vector.extract_strided_slice %112 {offsets = [5, 0], sizes = [1, 32], strides = [1, 1]} : vector<8x32xf32> to vector<1x32xf32>
    %119 = vector.extract_strided_slice %112 {offsets = [6, 0], sizes = [1, 32], strides = [1, 1]} : vector<8x32xf32> to vector<1x32xf32>
    %120 = tpu.concatenate %107, %107, %107, %107 in 0 : vector<16x32xf32>, vector<16x32xf32>, vector<16x32xf32>, vector<16x32xf32> -> vector<64x32xf32>
    %121 = tpu.concatenate %120, %120, %120, %120 in 1 : vector<64x32xf32>, vector<64x32xf32>, vector<64x32xf32>, vector<64x32xf32> -> vector<64x128xf32>
    %122 = arith.mulf %121, %10 : vector<64x128xf32>
    %cst_35 = arith.constant dense<0.000000e+00> : vector<64x48xf32>
    %123 = tpu.matmul %122, %108, %cst_35 {dimension_numbers = #tpu.dot_dimension_numbers<[1], [0], [0], [1], [0, 0, 1, 1], [], []>} : vector<64x128xf32>, vector<128x48xf32>, vector<64x48xf32> -> vector<64x48xf32>
    %124 = arith.addf %123, %109 : vector<64x48xf32>
    %125 = vector.extract_strided_slice %124 {offsets = [0, 0], sizes = [64, 8], strides = [1, 1]} : vector<64x48xf32> to vector<64x8xf32>
    %126 = vector.extract_strided_slice %124 {offsets = [0, 8], sizes = [64, 8], strides = [1, 1]} : vector<64x48xf32> to vector<64x8xf32>
    %127 = vector.extract_strided_slice %124 {offsets = [0, 16], sizes = [64, 32], strides = [1, 1]} : vector<64x48xf32> to vector<64x32xf32>
    %cst_36 = arith.constant dense<0.000000e+00> : vector<64x64xf32>
    %128 = tpu.matmul %125, %126, %cst_36 {dimension_numbers = #tpu.dot_dimension_numbers<[1], [1], [0], [0], [0, 0, 1, 0], [], []>} : vector<64x8xf32>, vector<64x8xf32>, vector<64x64xf32> -> vector<64x64xf32>
    %129 = arith.addf %128, %11 : vector<64x64xf32>
    %cst_37 = arith.constant dense<0xFF800000> : vector<64xf32>
    %130 = vector.multi_reduction <maximumf>, %129, %cst_37 [1] : vector<64x64xf32> to vector<64xf32>
    %131 = vector.shape_cast %130 : vector<64xf32> to vector<64x1xf32>
    %132 = vector.broadcast %131 : vector<64x1xf32> to vector<64x64xf32>
    %133 = arith.subf %129, %132 : vector<64x64xf32>
    %134 = math.exp %133 : vector<64x64xf32>
    %cst_38 = arith.constant dense<0.000000e+00> : vector<64xf32>
    %135 = vector.multi_reduction <add>, %134, %cst_38 [1] : vector<64x64xf32> to vector<64xf32>
    %136 = vector.shape_cast %135 : vector<64xf32> to vector<64x1xf32>
    %137 = tpu.reciprocal %136 {approx = true} : vector<64x1xf32> -> vector<64x1xf32>
    %138 = vector.broadcast %137 : vector<64x1xf32> to vector<64x64xf32>
    %139 = arith.mulf %134, %138 : vector<64x64xf32>
    %cst_39 = arith.constant dense<0.000000e+00> : vector<64x32xf32>
    %140 = tpu.matmul %139, %127, %cst_39 {dimension_numbers = #tpu.dot_dimension_numbers<[1], [0], [0], [1], [0, 0, 1, 1], [], []>} : vector<64x64xf32>, vector<64x32xf32>, vector<64x32xf32> -> vector<64x32xf32>
    %141 = vector.extract_strided_slice %140 {offsets = [0, 0], sizes = [16, 32], strides = [1, 1]} : vector<64x32xf32> to vector<16x32xf32>
    %142 = vector.broadcast %113 : vector<1x32xf32> to vector<16x32xf32>
    %143 = arith.addf %142, %141 : vector<16x32xf32>
    %144 = vector.extract_strided_slice %140 {offsets = [16, 0], sizes = [16, 32], strides = [1, 1]} : vector<64x32xf32> to vector<16x32xf32>
    %145 = arith.addf %143, %144 : vector<16x32xf32>
    %146 = vector.extract_strided_slice %140 {offsets = [32, 0], sizes = [16, 32], strides = [1, 1]} : vector<64x32xf32> to vector<16x32xf32>
    %147 = arith.addf %145, %146 : vector<16x32xf32>
    %148 = vector.extract_strided_slice %140 {offsets = [48, 0], sizes = [16, 32], strides = [1, 1]} : vector<64x32xf32> to vector<16x32xf32>
    %149 = arith.addf %147, %148 : vector<16x32xf32>
    %150 = arith.addf %107, %149 : vector<16x32xf32>
    %cst_40 = arith.constant dense<0.000000e+00> : vector<16xf32>
    %151 = vector.multi_reduction <add>, %150, %cst_40 [1] : vector<16x32xf32> to vector<16xf32>
    %152 = vector.shape_cast %151 : vector<16xf32> to vector<16x1xf32>
    %cst_41 = arith.constant 3.200000e+01 : f32
    %153 = vector.broadcast %cst_41 : f32 to vector<16x1xf32>
    %154 = arith.divf %152, %153 : vector<16x1xf32>
    %155 = vector.broadcast %154 : vector<16x1xf32> to vector<16x32xf32>
    %156 = arith.subf %150, %155 : vector<16x32xf32>
    %157 = arith.mulf %156, %156 : vector<16x32xf32>
    %cst_42 = arith.constant dense<0.000000e+00> : vector<16xf32>
    %158 = vector.multi_reduction <add>, %157, %cst_42 [1] : vector<16x32xf32> to vector<16xf32>
    %159 = vector.shape_cast %158 : vector<16xf32> to vector<16x1xf32>
    %cst_43 = arith.constant 3.200000e+01 : f32
    %160 = vector.broadcast %cst_43 : f32 to vector<16x1xf32>
    %161 = arith.divf %159, %160 : vector<16x1xf32>
    %162 = vector.broadcast %154 : vector<16x1xf32> to vector<16x32xf32>
    %163 = arith.subf %150, %162 : vector<16x32xf32>
    %cst_44 = arith.constant 9.99999974E-6 : f32
    %164 = vector.broadcast %cst_44 : f32 to vector<16x1xf32>
    %165 = arith.addf %161, %164 : vector<16x1xf32>
    %166 = math.rsqrt %165 : vector<16x1xf32>
    %167 = vector.broadcast %166 : vector<16x1xf32> to vector<16x32xf32>
    %168 = arith.mulf %163, %167 : vector<16x32xf32>
    %169 = vector.broadcast %116 : vector<1x32xf32> to vector<16x32xf32>
    %170 = arith.mulf %168, %169 : vector<16x32xf32>
    %171 = vector.broadcast %117 : vector<1x32xf32> to vector<16x32xf32>
    %172 = arith.addf %170, %171 : vector<16x32xf32>
    %cst_45 = arith.constant dense<0.000000e+00> : vector<16x32xf32>
    %173 = tpu.matmul %172, %110, %cst_45 {dimension_numbers = #tpu.dot_dimension_numbers<[1], [0], [0], [1], [0, 0, 1, 1], [], []>} : vector<16x32xf32>, vector<32x32xf32>, vector<16x32xf32> -> vector<16x32xf32>
    %174 = vector.broadcast %114 : vector<1x32xf32> to vector<16x32xf32>
    %175 = arith.addf %173, %174 : vector<16x32xf32>
    %cst_46 = arith.constant 0.000000e+00 : f32
    %176 = vector.broadcast %cst_46 : f32 to vector<16x32xf32>
    %177 = arith.maximumf %175, %176 : vector<16x32xf32>
    %cst_47 = arith.constant dense<0.000000e+00> : vector<16x32xf32>
    %178 = tpu.matmul %177, %111, %cst_47 {dimension_numbers = #tpu.dot_dimension_numbers<[1], [0], [0], [1], [0, 0, 1, 1], [], []>} : vector<16x32xf32>, vector<32x32xf32>, vector<16x32xf32> -> vector<16x32xf32>
    %179 = vector.broadcast %115 : vector<1x32xf32> to vector<16x32xf32>
    %180 = arith.addf %178, %179 : vector<16x32xf32>
    %181 = arith.addf %172, %180 : vector<16x32xf32>
    %cst_48 = arith.constant dense<0.000000e+00> : vector<16xf32>
    %182 = vector.multi_reduction <add>, %181, %cst_48 [1] : vector<16x32xf32> to vector<16xf32>
    %183 = vector.shape_cast %182 : vector<16xf32> to vector<16x1xf32>
    %cst_49 = arith.constant 3.200000e+01 : f32
    %184 = vector.broadcast %cst_49 : f32 to vector<16x1xf32>
    %185 = arith.divf %183, %184 : vector<16x1xf32>
    %186 = vector.broadcast %185 : vector<16x1xf32> to vector<16x32xf32>
    %187 = arith.subf %181, %186 : vector<16x32xf32>
    %188 = arith.mulf %187, %187 : vector<16x32xf32>
    %cst_50 = arith.constant dense<0.000000e+00> : vector<16xf32>
    %189 = vector.multi_reduction <add>, %188, %cst_50 [1] : vector<16x32xf32> to vector<16xf32>
    %190 = vector.shape_cast %189 : vector<16xf32> to vector<16x1xf32>
    %cst_51 = arith.constant 3.200000e+01 : f32
    %191 = vector.broadcast %cst_51 : f32 to vector<16x1xf32>
    %192 = arith.divf %190, %191 : vector<16x1xf32>
    %193 = vector.broadcast %185 : vector<16x1xf32> to vector<16x32xf32>
    %194 = arith.subf %181, %193 : vector<16x32xf32>
    %cst_52 = arith.constant 9.99999974E-6 : f32
    %195 = vector.broadcast %cst_52 : f32 to vector<16x1xf32>
    %196 = arith.addf %192, %195 : vector<16x1xf32>
    %197 = math.rsqrt %196 : vector<16x1xf32>
    %198 = vector.broadcast %197 : vector<16x1xf32> to vector<16x32xf32>
    %199 = arith.mulf %194, %198 : vector<16x32xf32>
    %200 = vector.broadcast %118 : vector<1x32xf32> to vector<16x32xf32>
    %201 = arith.mulf %199, %200 : vector<16x32xf32>
    %202 = vector.broadcast %119 : vector<1x32xf32> to vector<16x32xf32>
    %203 = arith.addf %201, %202 : vector<16x32xf32>
    %c64 = arith.constant 64 : index
    %c0_53 = arith.constant 0 : index
    %204 = vector.load %arg2[%c64, %c0_53] : memref<168x128xf32, #tpu.memory_space<vmem>>, vector<32x128xf32>
    %c96 = arith.constant 96 : index
    %c0_54 = arith.constant 0 : index
    %205 = vector.load %arg2[%c96, %c0_54] : memref<168x128xf32, #tpu.memory_space<vmem>>, vector<1x128xf32>
    %cst_55 = arith.constant dense<0.000000e+00> : vector<16x128xf32>
    %206 = tpu.matmul %203, %204, %cst_55 {dimension_numbers = #tpu.dot_dimension_numbers<[1], [0], [0], [1], [0, 0, 1, 1], [], []>} : vector<16x32xf32>, vector<32x128xf32>, vector<16x128xf32> -> vector<16x128xf32>
    %207 = vector.broadcast %205 : vector<1x128xf32> to vector<16x128xf32>
    %208 = arith.addf %206, %207 : vector<16x128xf32>
    %c0_56 = arith.constant 0 : index
    %c0_57 = arith.constant 0 : index
    %209 = vector.load %arg3[%c0_56, %c0_57] : memref<16x128xf32, #tpu.memory_space<vmem>>, vector<16x128xf32>
    tpu.vector_store %arg3[%c0_56, %c0_57], %208 {strides = array<i32>} : memref<16x128xf32, #tpu.memory_space<vmem>>, vector<16x128xf32>,
    return
  }
}

</mosaic_0001>

<bundles_post_ra>
// kernel: mtcn_lm_forward.1
= control target key start
LH: loop header
LB: loop body
LE: loop exit
PB: predicated region body
PF: predicated region fallthrough
CT: control target
= control target key end

     0   :  { %v2506_v2 = vmov 0   ;;  %s3273_s0 = inlined_call_operand.vmem [shape: s32[16,1], index: 0, kind: input, shape index: {}]   ;;  %s3274_s1 = inlined_call_operand.vmem [shape: f32[560,48], index: 1, kind: input, shape index: {}]   ;;  %s3275_s2 = inlined_call_operand.vmem [shape: f32[168,128], index: 2, kind: input, shape index: {}]   ;;  %s3276_s3 = inlined_call_operand.hbm [shape: f32[16,128], index: 3, kind: output, shape index: {}]  }
   0x1   :  { %v15_v0 = vld [vmem:[%s3273_s0] sm:$0xff]  ;;  %v32_v1 = vld [vmem:[%s3274_s1 + $0x8] sm:$0xff]  ;;  %2403 = vset.pattern.permute.xlu0 %v2506_v2 }
   0x2   :  { %2131 = vmatprep.subr.mxu0 %v32_v1  ;;  %v31_v3 = vld [vmem:[%s3274_s1] sm:$0xff] }
   0x3   :  { %8 = vsyncpa [#allocation3], 0  ;;  %20 = vperm.xlu0 %2403, %v15_v0   ;;  %2132 = vmatpush3.msra.mxu0 %v32_v1  ;;  %v16_v4 = vld [vmem:[%s3273_s0 + $0x8] sm:$0xff]  ;;  %v17_v5 = vlaneseq  ;;  %vm35_vm0 = vcmask 130048   ;;  %v2507_v8 = vmov 0.0   ;;  %v148_v12 = vld [vmem:[%s3274_s1 + $0x98] sm:$0xff] }
   0x4   :  { %2133 = vmatprep.subr.mxu0 %v31_v3  ;;  %v147_v13 = vld [vmem:[%s3274_s1 + $0x90] sm:$0xff]  ;;  %2138 = vmatprep.subr.mxu1 %v148_v12  ;;  %v146_v14 = vld [vmem:[%s3274_s1 + $0x88] sm:$0xff]  ;;  %v145_v15 = vld [vmem:[%s3274_s1 + $0x80] sm:$0xff]  ;;  %s2508_s27 = smov 32   ;;  %s2509_s28 = smov 64   ;;  %vm186_vm3 = vcmask 261120  }
   0x5   :  { %2134 = vmatpush3.msra.mxu0 %v31_v3  ;;  %v18_v6 = vand.u32 127, %v17_v5  ;;  %2139 = vmatpush3.msra.mxu1 %v148_v12  ;;  %v144_v16 = vld [vmem:[%s3274_s1 + $0x78] sm:$0xff]  ;;  %v143_v17 = vld [vmem:[%s3274_s1 + $0x70] sm:$0xff]  ;;  %v142_v18 = vld [vmem:[%s3274_s1 + $0x68] sm:$0xff]  ;;  %s2510_s29 = smov 96   ;;  %vm192_vm4 = vcmask 785408  }
   0x6   :  { %2140 = vmatprep.subr.mxu1 %v147_v13  ;;  %v141_v19 = vld [vmem:[%s3274_s1 + $0x60] sm:$0xff]  ;;  %v140_v20 = vld [vmem:[%s3274_s1 + $0x58] sm:$0xff]  ;;  %v139_v21 = vld [vmem:[%s3274_s1 + $0x50] sm:$0xff]  ;;  %vm189_vm5 = vcmask 523264   ;;  %vm332_vm6 = vcmask 64512   ;;  %s2511_s26 = smov 120  }
   0x7   :  { %23 = vperm.xlu0 %2403, %v16_v4   ;;  %2141 = vmatpush3.msra.mxu1 %v147_v13  ;;  %v138_v22 = vld [vmem:[%s3274_s1 + $0x48] sm:$0xff]  ;;  %v137_v23 = vld [vmem:[%s3274_s1 + $0x40] sm:$0xff]  ;;  %v136_v24 = vld [vmem:[%s3274_s1 + $0x38] sm:$0xff]  ;;  %s2512_s24 = smov 112   ;;  %s2513_s20 = smov [#allocation2]  }
   0x8   :  { %2142 = vmatprep.subr.mxu1 %v146_v14  ;;  %v34_v25 = vld [vmem:[%s3274_s1 + $0x18] sm:$0xff]  ;;  %v135_v26 = vld [vmem:[%s3274_s1 + $0x30] sm:$0xff]  ;;  %v134_v27 = vld [vmem:[%s3274_s1 + $0x28] sm:$0xff] }
   0x9   :  { %2143 = vmatpush3.msra.mxu1 %v146_v14  ;;  %v33_v29 = vld [vmem:[%s3274_s1 + $0x10] sm:$0xff]  ;;  %v133_v32 = vld [vmem:[%s3274_s1 + $0x20] sm:$0xff]  ;;  %v2633_v44 = vld [vmem:[%s3275_s2 + $0x8] sm:$0xff] }
   0xa   :  { %2144 = vmatprep.subr.mxu1 %v145_v15  ;;  %v2624_v39 = vld [vmem:[%s3275_s2] sm:$0xff]  ;;  %v2640_v48 = vld [vmem:[%s3275_s2 + $0x10] sm:$0xff]  ;;  %v2648_v52 = vld [vmem:[%s3275_s2 + $0x18] sm:$0xff] }
   0xb   :  { %2145 = vmatpush3.msra.mxu1 %v145_v15  ;;  %v2653_v53 = vld [vmem:[%s3275_s2 + $0x20] sm:$0xff]  ;;  %v2660_v56 = vld [vmem:[%s3275_s2 + $0x28] sm:$0xff]  ;;  %v2665_v57 = vld [vmem:[%s3275_s2 + $0x30] sm:$0xff] }
   0xc   :  { %2146 = vmatprep.subr.mxu1 %v144_v16  ;;  %v2672_v60 = vld [vmem:[%s3275_s2 + $0x38] sm:$0xff]  ;;  %v149_v63 = vld [vmem:[%s3274_s1 + $0xa0] sm:$0xff] }
   0xd   :  { %2147 = vmatpush3.msra.mxu1 %v144_v16  ;;  %v153_v14 = vld [vmem:[%s3274_s1 + $0xc0] sm:$0xff]  ;;  %v152_v16 = vld [vmem:[%s3274_s1 + $0xb8] sm:$0xff] }
   0xe   :  { %2148 = vmatprep.subr.mxu1 %v143_v17 }
   0xf   :  { %2149 = vmatpush3.msra.mxu1 %v143_v17 }
  0x10   :  { %2150 = vmatprep.subr.mxu1 %v142_v18 }
  0x11   :  { %2151 = vmatpush3.msra.mxu1 %v142_v18  ;;  %v151_v18 = vld [vmem:[%s3274_s1 + $0xb0] sm:$0xff] }
  0x12   :  { %2152 = vmatprep.subr.mxu1 %v141_v19 }
  0x13   :  { %2153 = vmatpush3.msra.mxu1 %v141_v19 }
  0x14   :  { %2154 = vmatprep.subr.mxu1 %v140_v20 }
  0x15   :  { %2155 = vmatpush3.msra.mxu1 %v140_v20  ;;  %v150_v20 = vld [vmem:[%s3274_s1 + $0xa8] sm:$0xff] }
  0x16   :  { %2156 = vmatprep.subr.mxu1 %v139_v21 }
  0x17   :  { %2157 = vmatpush3.msra.mxu1 %v139_v21 }
  0x18   :  { %2158 = vmatprep.subr.mxu1 %v138_v22 }
  0x19   :  { %2159 = vmatpush3.msra.mxu1 %v138_v22 }
  0x1a   :  { %2160 = vmatprep.subr.mxu1 %v137_v23 }
  0x1b   :  { %2161 = vmatpush3.msra.mxu1 %v137_v23 }
  0x1c   :  { %2162 = vmatprep.subr.mxu1 %v136_v24 }
  0x1d   :  { %2163 = vmatpush3.msra.mxu1 %v136_v24 }
  0x1e   :  { %2164 = vmatprep.subr.mxu1 %v135_v26 }
  0x1f   :  { %2165 = vmatpush3.msra.mxu1 %v135_v26 }
  0x20   :  { %2166 = vmatprep.subr.mxu1 %v134_v27 }
  0x21   :  { %2167 = vmatpush3.msra.mxu1 %v134_v27 }
  0x22   :  { %2168 = vmatprep.subr.mxu1 %v133_v32 }
  0x23   :  { %2169 = vmatpush3.msra.mxu1 %v133_v32  ;;  %v2766_v32 = vld [vmem:[%s3275_s2 + $0x70] sm:$0xff] }
  0x7e   :  { %v21_v7 = vpop.permute.xlu0 %20 }
  0x7f   :  { %vm25_vm1 = vcmp.eq.s32.totalorder %v21_v7, %v18_v6  ;;  %v156_v7 = vld [vmem:[%s3274_s1 + $0xd8] sm:$0xff] }
  0x80   :  { %v1922_v9 = vsel %vm25_vm1, 1.0, %v2507_v8 }
  0x81   :  { %2135 = vmatprep.mubr.msk.f32.mxu0 %vm35_vm0, %v1922_v9  ;;  %v155_v9 = vld [vmem:[%s3274_s1 + $0xd0] sm:$0xff] }
  0x82   :  { %v24_v10 = vpop.permute.xlu0 %23 }
  0x83   :  { %vm26_vm2 = vcmp.eq.s32.totalorder %v24_v10, %v18_v6 }
  0x84   :  { %v1923_v11 = vsel %vm26_vm2, 1.0, %v2507_v8 }
  0x85   :  { %2136 = vmatmul.mubr.msk.f32.vlgmr.msra.gmra.mxu0 %vm35_vm0, %v1923_v11  ;;  %v154_v11 = vld [vmem:[%s3274_s1 + $0xc8] sm:$0xff] }
 0x145   :  { %v2137_v28 = vpop.f32.mrf.mxu0 }
 0x146   :  { %v2600_v30 = vadd.f32 %v2137_v28, %v34_v25 }
 0x147   :  { %v108_v31 = vpop.f32.mrf.mxu0 }
 0x148   :  { %v2605_v33 = vadd.f32 %v108_v31, %v33_v29  ;;  %170 = vrot.lane.b32.xlu1 %v2600_v30, %s2508_s27 }
 0x14a   :  { %174 = vrot.lane.b32.xlu0 %v2605_v33, %s2509_s28 }
 0x14c   :  { %176 = vrot.lane.b32.xlu1 %v2600_v30, %s2509_s28 }
 0x14e   :  { %180 = vrot.lane.b32.xlu0 %v2605_v33, %s2510_s29 }
 0x150   :  { %168 = vrot.lane.b32.xlu1 %v2605_v33, %s2508_s27 }
 0x154   :  { %182 = vrot.lane.b32.xlu1 %v2600_v30, %s2510_s29 }
 0x1ba   :  { %v171_v34 = vpop.permute.xlu1 %170 }
 0x1bb   :  { %v188_v42 = vsel %vm186_vm3, %v2600_v30, %v171_v34 }
 0x1bc   :  { %v175_v35 = vpop.permute.xlu0 %174 }
 0x1be   :  { %v177_v36 = vpop.permute.xlu1 %176 }
 0x1bf   :  { %v191_v45 = vsel %vm189_vm5, %v188_v42, %v177_v36  ;;  %v2779_v42 = vld [vmem:[%s3275_s2 + $0x78] sm:$0xff] }
 0x1c0   :  { %v181_v40 = vpop.permute.xlu0 %180 }
 0x1c2   :  { %v169_v37 = vpop.permute.xlu1 %168 }
 0x1c3   :  { %v187_v38 = vsel %vm186_vm3, %v2605_v33, %v169_v37 }
 0x1c4   :  { %v190_v41 = vsel %vm189_vm5, %v187_v38, %v175_v35  ;;  %v2771_v35 = vld [vmem:[%s3275_s2 + $0x68] sm:$0xff] }
 0x1c5   :  { %v193_v43 = vsel %vm192_vm4, %v190_v41, %v181_v40 }
 0x1c6   :  { %v183_v46 = vpop.permute.xlu1 %182  ;;  %v195_v47 = vmul.f32 %v193_v43, %v2624_v39  ;;  %v197_v51 = vmul.f32 %v193_v43, %v2640_v48  ;;  %v199_v55 = vmul.f32 %v193_v43, %v2653_v53  ;;  %v201_v59 = vmul.f32 %v193_v43, %v2665_v57 }
 0x1c7   :  { %v194_v49 = vsel %vm192_vm4, %v191_v45, %v183_v46  ;;  %v2785_v45 = vld [vmem:[%s3275_s2 + $0x80] sm:$0xff] }
 0x1c8   :  { %2170 = vmatprep.mubr.f32.mxu1 %v195_v47  ;;  %v196_v50 = vmul.f32 %v194_v49, %v2633_v44  ;;  %v198_v54 = vmul.f32 %v194_v49, %v2648_v52  ;;  %v200_v58 = vmul.f32 %v194_v49, %v2660_v56  ;;  %v202_v61 = vmul.f32 %v194_v49, %v2672_v60 }
 0x1ca   :  { %2171 = vmatmul.mubr.f32.vlgmr.msra.gmra.mxu1 %v196_v50  ;;  %v2791_v50 = vld [vmem:[%s3275_s2 + $0x88] sm:$0xff] }
 0x1cb   :  { %2173 = vmatprep.mubr.f32.mxu1 %v197_v51 }
 0x1ce   :  { %2174 = vmatmul.mubr.f32.gmra.mxu1 %v198_v54 }
 0x1cf   :  { %2176 = vmatprep.mubr.f32.mxu1 %v199_v55  ;;  %v2798_v55 = vld [vmem:[%s3275_s2 + $0x90] sm:$0xff] }
 0x1d2   :  { %2177 = vmatmul.mubr.f32.gmra.mxu1 %v200_v58 }
 0x1d3   :  { %2179 = vmatprep.mubr.f32.mxu1 %v201_v59 }
 0x1d6   :  { %2180 = vmatmul.mubr.f32.gmra.mxu1 %v202_v61 }
 0x28a   :  { %v2172_v62 = vpop.f32.mrf.mxu1 }
 0x28b   :  { %v2725_v22 = vadd.f32 %v2172_v62, %v150_v20 }
 0x28c   :  { %v269_v0 = vpop.f32.mrf.mxu1 }
 0x28d   :  { %v2678_v1 = vadd.f32 %v269_v0, %v149_v63  ;;  %v2807_v0 = vld [vmem:[%s3275_s2 + $0xa0] sm:$0xff] }
 0x28e   :  { %v2175_v2 = vpop.f32.mrf.mxu1 }
 0x28f   :  { %2198 = vmatprep.mubr.msk.f32.mxu0 %vm332_vm6, %v2678_v1  ;;  %v2714_v19 = vadd.f32 %v2175_v2, %v152_v16 }
 0x290   :  { %v279_v3 = vpop.f32.mrf.mxu1 }
 0x291   :  { %v2721_v21 = vadd.f32 %v279_v3, %v151_v18 }
 0x292   :  { %v2178_v4 = vpop.f32.mrf.mxu1 }
 0x293   :  { %v2700_v15 = vadd.f32 %v2178_v4, %v154_v11 }
 0x294   :  { %v289_v6 = vpop.f32.mrf.mxu1 }
 0x295   :  { %v2707_v17 = vadd.f32 %v289_v6, %v153_v14 }
 0x296   :  { %v2181_v8 = vpop.f32.mrf.mxu1 }
 0x297   :  { %v2688_v10 = vadd.f32 %v2181_v8, %v156_v7  ;;  %v2823_v8 = vld [vmem:[%s3275_s2 + $0x98] sm:$0xff] }
 0x298   :  { %v299_v12 = vpop.f32.mrf.mxu1 }
 0x299   :  { %v2693_v13 = vadd.f32 %v299_v12, %v155_v9  ;;  %330 = vrot.lane.b32.xlu0 %v2688_v10, %s2511_s26 }
 0x29b   :  { %328 = vrot.lane.b32.xlu1 %v2693_v13, %s2511_s26 }
 0x29d   :  { %326 = vrot.lane.b32.xlu0 %v2700_v15, %s2511_s26 }
 0x29f   :  { %324 = vrot.lane.b32.xlu1 %v2707_v17, %s2511_s26 }
 0x2a1   :  { %322 = vrot.lane.b32.xlu0 %v2714_v19, %s2511_s26 }
 0x2a3   :  { %320 = vrot.lane.b32.xlu1 %v2721_v21, %s2511_s26 }
 0x2a5   :  { %318 = vrot.lane.b32.xlu0 %v2725_v22, %s2511_s26 }
 0x2a7   :  { %316 = vrot.lane.b32.xlu1 %v2678_v1, %s2511_s26 }
 0x30b   :  { %v331_v23 = vpop.permute.xlu0 %330 }
 0x30c   :  { %2182 = vmatprep.subr.msk.mxu0 %vm332_vm6, %v331_v23 }
 0x30d   :  { %2183 = vmatpush3.xpose.msk.msra.mxu0 %vm332_vm6, %v331_v23  ;;  %v329_v24 = vpop.permute.xlu1 %328 }
 0x30e   :  { %2184 = vmatprep.subr.msk.mxu0 %vm332_vm6, %v329_v24 }
 0x30f   :  { %v327_v25 = vpop.permute.xlu0 %326 }
 0x311   :  { %2185 = vmatpush3.xpose.msk.msra.mxu0 %vm332_vm6, %v329_v24  ;;  %v325_v26 = vpop.permute.xlu1 %324 }
 0x312   :  { %2186 = vmatprep.subr.msk.mxu0 %vm332_vm6, %v327_v25 }
 0x313   :  { %v323_v27 = vpop.permute.xlu0 %322 }
 0x315   :  { %2187 = vmatpush3.xpose.msk.msra.mxu0 %vm332_vm6, %v327_v25  ;;  %v321_v28 = vpop.permute.xlu1 %320 }
 0x316   :  { %2188 = vmatprep.subr.msk.mxu0 %vm332_vm6, %v325_v26 }
 0x317   :  { %v319_v29 = vpop.permute.xlu0 %318 }
 0x319   :  { %2189 = vmatpush3.xpose.msk.msra.mxu0 %vm332_vm6, %v325_v26  ;;  %v317_v31 = vpop.permute.xlu1 %316 }
 0x31a   :  { %2190 = vmatprep.subr.msk.mxu0 %vm332_vm6, %v323_v27 }
 0x31d   :  { %2191 = vmatpush3.xpose.msk.msra.mxu0 %vm332_vm6, %v323_v27 }
 0x31e   :  { %2192 = vmatprep.subr.msk.mxu0 %vm332_vm6, %v321_v28 }
 0x321   :  { %2193 = vmatpush3.xpose.msk.msra.mxu0 %vm332_vm6, %v321_v28 }
 0x322   :  { %2194 = vmatprep.subr.msk.mxu0 %vm332_vm6, %v319_v29 }
 0x325   :  { %2195 = vmatpush3.xpose.msk.msra.mxu0 %vm332_vm6, %v319_v29 }
 0x326   :  { %2196 = vmatprep.subr.msk.mxu0 %vm332_vm6, %v317_v31 }
 0x329   :  { %2197 = vmatpush3.xpose.msk.msra.mxu0 %vm332_vm6, %v317_v31 }
 0x32c   :  { %2199 = vmatmul.mubr.msk.f32.vlgmr.msra.gmra.mxu0 %vm332_vm6, %v2725_v22 }
 0x32d   :  { %2201 = vmatprep.mubr.msk.f32.mxu0 %vm332_vm6, %v2721_v21 }
 0x330   :  { %2202 = vmatmul.mubr.msk.f32.gmra.mxu0 %vm332_vm6, %v2714_v19 }
 0x331   :  { %2204 = vmatprep.mubr.msk.f32.mxu0 %vm332_vm6, %v2707_v17 }
 0x334   :  { %2205 = vmatmul.mubr.msk.f32.gmra.mxu0 %vm332_vm6, %v2700_v15 }
 0x335   :  { %2207 = vmatprep.mubr.msk.f32.mxu0 %vm332_vm6, %v2693_v13 }
 0x338   :  { %2208 = vmatmul.mubr.msk.f32.gmra.mxu0 %vm332_vm6, %v2688_v10 }
 0x3ec   :  { %v2200_v34 = vpop.f32.mrf.mxu0 }
 0x3ed   :  { %v437_v36 = vadd.f32 %v2200_v34, %v2766_v32 }
 0x3ee   :  { %v431_v37 = vpop.f32.mrf.mxu0 }
 0x3ef   :  { %v432_v38 = vadd.f32 %v431_v37, %v2771_v35  ;;  %v473_v40 = vsel %vm189_vm5, %v437_v36, -inf }
 0x3f0   :  { %474 = vmax.xlane.f32.xlu1 %v473_v40  ;;  %v2203_v41 = vpop.f32.mrf.mxu0 }
 0x3f1   :  { %v470_v43 = vsel %vm189_vm5, %v432_v38, -inf  ;;  %v447_v51 = vadd.f32 %v2203_v41, %v2785_v45 }
 0x3f2   :  { %v441_v46 = vpop.f32.mrf.mxu0  ;;  %471 = vmax.xlane.f32.xlu0 %v470_v43 }
 0x3f3   :  { %v442_v47 = vadd.f32 %v441_v46, %v2779_v42  ;;  %v479_v63 = vsel %vm189_vm5, %v447_v51, -inf }
 0x3f4   :  { %v2206_v49 = vpop.f32.mrf.mxu0 }
 0x3f5   :  { %v476_v54 = vsel %vm189_vm5, %v442_v47, -inf  ;;  %v457_v61 = vadd.f32 %v2206_v49, %v2798_v55 }
 0x3f6   :  { %v451_v58 = vpop.f32.mrf.mxu0  ;;  %477 = vmax.xlane.f32.xlu0 %v476_v54 }
 0x3f7   :  { %v452_v59 = vadd.f32 %v451_v58, %v2791_v50  ;;  %v485_v4 = vsel %vm189_vm5, %v457_v61, -inf }
 0x3f8   :  { %v2209_v2 = vpop.f32.mrf.mxu0 }
 0x3f9   :  { %v482_v62 = vsel %vm189_vm5, %v452_v59, -inf  ;;  %v467_v3 = vadd.f32 %v2209_v2, %v2807_v0 }
 0x3fa   :  { %483 = vmax.xlane.f32.xlu1 %v482_v62  ;;  %480 = vmax.xlane.f32.xlu0 %v479_v63  ;;  %v461_v7 = vpop.f32.mrf.mxu0 }
 0x3fb   :  { %v491_v6 = vsel %vm189_vm5, %v467_v3, -inf  ;;  %v2826_v9 = vadd.f32 %v461_v7, %v2823_v8 }
 0x3fe   :  { %486 = vmax.xlane.f32.xlu0 %v485_v4 }
 0x402   :  { %492 = vmax.xlane.f32.xlu0 %v491_v6 }
 0x40b   :  { %572 = vrot.lane.b32.xlu1 %v2688_v10, %s2512_s24  ;;  %v488_v10 = vsel %vm189_vm5, %v2826_v9, -inf }
 0x40f   :  { %568 = vrot.lane.b32.xlu1 %v2700_v15, %s2512_s24 }
 0x418   :  { %570 = vrot.lane.b32.xlu0 %v2693_v13, %s2512_s24 }
 0x41c   :  { %564 = vrot.lane.b32.xlu0 %v2714_v19, %s2512_s24 }
 0x433   :  { %489 = vmax.xlane.f32.xlu1 %v488_v10 }
 0x444   :  { %566 = vrot.lane.b32.xlu1 %v2707_v17, %s2512_s24 }
 0x448   :  { %562 = vrot.lane.b32.xlu1 %v2721_v21, %s2512_s24 }
 0x479   :  { %v475_v11 = vpop.xlane.xlu1 %474 }
 0x47a   :  { %v495_v12 = vsub.f32 %v437_v36, %v475_v11 }
 0x47b   :  { %v472_v13 = vpop.xlane.xlu0 %471 }
 0x47c   :  { %v504_v14 = vmul.f32 1.442695, %v495_v12  ;;  %v494_v15 = vsub.f32 %v432_v38, %v472_v13 }
 0x47e   :  { %2404 = vpow2.f32 %v504_v14  ;;  %v502_v16 = vmul.f32 1.442695, %v494_v15 }
 0x47f   :  { %v478_v18 = vpop.xlane.xlu0 %477 }
 0x480   :  { %2406 = vpow2.f32 %v502_v16  ;;  %v496_v19 = vsub.f32 %v442_v47, %v478_v18 }
 0x482   :  { %v506_v20 = vmul.f32 1.442695, %v496_v19 }
 0x483   :  { %v484_v23 = vpop.xlane.xlu1 %483  ;;  %v481_v24 = vpop.xlane.xlu0 %480 }
 0x484   :  { %2408 = vpow2.f32 %v506_v20  ;;  %v498_v25 = vsub.f32 %v452_v59, %v484_v23  ;;  %v497_v26 = vsub.f32 %v447_v51, %v481_v24 }
 0x486   :  { %v510_v17 = vmul.f32 1.442695, %v498_v25  ;;  %v508_v27 = vmul.f32 1.442695, %v497_v26 }
 0x487   :  { %v573_v28 = vpop.permute.xlu1 %572  ;;  %v487_v21 = vpop.xlane.xlu0 %486 }
 0x488   :  { %2410 = vpow2.f32 %v510_v17  ;;  %v499_v29 = vsub.f32 %v457_v61, %v487_v21  ;;  %2210 = vmatprep.subr.mxu1 %v573_v28 }
 0x489   :  { %2412 = vpow2.f32 %v508_v27  ;;  %2211 = vmatpush3.msra.mxu1 %v573_v28 }
 0x48a   :  { %v512_v31 = vmul.f32 1.442695, %v499_v29 }
 0x48b   :  { %v2834_v34 = vpop.eup %2404  ;;  %v493_v36 = vpop.xlane.xlu0 %492 }
 0x48c   :  { %2414 = vpow2.f32 %v512_v31  ;;  %v501_v37 = vsub.f32 %v467_v3, %v493_v36  ;;  %v521_v38 = vsel %vm189_vm5, %v2834_v34, 0.0  ;;  %v569_v49 = vpop.permute.xlu1 %568 }
 0x48d   :  { %v2407_v40 = vpop.eup %2406  ;;  %522 = vadd.xlane.f32.xlu0 %v521_v38 }
 0x48e   :  { %v516_v41 = vmul.f32 1.442695, %v501_v37  ;;  %v518_v43 = vsel %vm189_vm5, %v2407_v40, 0.0 }
 0x48f   :  { %519 = vadd.xlane.f32.xlu1 %v518_v43  ;;  %v571_v46 = vpop.permute.xlu0 %570 }
 0x490   :  { %2416 = vpow2.f32 %v516_v41  ;;  %2212 = vmatprep.subr.mxu1 %v571_v46 }
 0x491   :  { %v2839_v47 = vpop.eup %2408  ;;  %2213 = vmatpush3.msra.mxu1 %v571_v46 }
 0x492   :  { %2214 = vmatprep.subr.mxu1 %v569_v49  ;;  %v524_v51 = vsel %vm189_vm5, %v2839_v47, 0.0 }
 0x493   :  { %525 = vadd.xlane.f32.xlu1 %v524_v51  ;;  %2215 = vmatpush3.msra.mxu1 %v569_v49  ;;  %v565_v11 = vpop.permute.xlu0 %564  ;;  %v2882_v51 = vld [vmem:[%s3274_s1 + $0x120] sm:$0xff] }
 0x495   :  { %v2843_v54 = vpop.eup %2410 }
 0x496   :  { %v2413_v58 = vpop.eup %2412  ;;  %v530_v59 = vsel %vm189_vm5, %v2843_v54, 0.0 }
 0x497   :  { %531 = vadd.xlane.f32.xlu1 %v530_v59  ;;  %v527_v61 = vsel %vm189_vm5, %v2413_v58, 0.0 }
 0x498   :  { %528 = vadd.xlane.f32.xlu0 %v527_v61 }
 0x499   :  { %v2848_v62 = vpop.eup %2414 }
 0x49a   :  { %v533_v63 = vsel %vm189_vm5, %v2848_v62, 0.0 }
 0x49c   :  { %534 = vadd.xlane.f32.xlu0 %v533_v63 }
 0x49d   :  { %v2852_v2 = vpop.eup %2416 }
 0x49e   :  { %v539_v3 = vsel %vm189_vm5, %v2852_v2, 0.0 }
 0x4a0   :  { %540 = vadd.xlane.f32.xlu0 %v539_v3 }
 0x4b6   :  { %560 = vrot.lane.b32.xlu0 %v2725_v22, %s2512_s24 }
 0x4bc   :  { %v490_v4 = vpop.xlane.xlu1 %489 }
 0x4bd   :  { %v500_v6 = vsub.f32 %v2826_v9, %v490_v4 }
 0x4bf   :  { %v514_v7 = vmul.f32 1.442695, %v500_v6 }
 0x4c0   :  { %v567_v10 = vpop.permute.xlu1 %566 }
 0x4c1   :  { %2418 = vpow2.f32 %v514_v7  ;;  %2216 = vmatprep.subr.mxu1 %v567_v10 }
 0x4c2   :  { %2217 = vmatpush3.msra.mxu1 %v567_v10 }
 0x4c3   :  { %2218 = vmatprep.subr.mxu1 %v565_v11 }
 0x4c4   :  { %v563_v12 = vpop.permute.xlu1 %562  ;;  %2219 = vmatpush3.msra.mxu1 %v565_v11 }
 0x4c5   :  { %2220 = vmatprep.subr.mxu1 %v563_v12 }
 0x4c6   :  { %2221 = vmatpush3.msra.mxu1 %v563_v12 }
 0x4ce   :  { %v2419_v13 = vpop.eup %2418 }
 0x4cf   :  { %v536_v14 = vsel %vm189_vm5, %v2419_v13, 0.0 }
 0x4d0   :  { %537 = vadd.xlane.f32.xlu1 %v536_v14 }
 0x4e1   :  { %558 = vrot.lane.b32.xlu1 %v2678_v1, %s2512_s24 }
 0x516   :  { %v523_v9 = vpop.xlane.xlu0 %522 }
 0x518   :  { %v520_v22 = vpop.xlane.xlu1 %519 }
 0x519   :  { %2420 = vrcp.f32 %v520_v22 }
 0x51a   :  { %2422 = vrcp.f32 %v523_v9 }
 0x51c   :  { %v526_v24 = vpop.xlane.xlu1 %525 }
 0x51d   :  { %2424 = vrcp.f32 %v526_v24 }
 0x520   :  { %v532_v25 = vpop.xlane.xlu1 %531 }
 0x521   :  { %v529_v15 = vpop.xlane.xlu0 %528 }
 0x522   :  { %2426 = vrcp.f32 %v529_v15 }
 0x523   :  { %2428 = vrcp.f32 %v532_v25 }
 0x525   :  { %v535_v16 = vpop.xlane.xlu0 %534 }
 0x526   :  { %v2421_v18 = vpop.eup %2420  ;;  %2430 = vrcp.f32 %v535_v16 }
 0x527   :  { %v550_v19 = vmul.f32 %v2421_v18, %v2407_v40  ;;  %v2423_v26 = vpop.eup %2422 }
 0x528   :  { %v551_v28 = vmul.f32 %v2423_v26, %v2834_v34 }
 0x529   :  { %v541_v20 = vpop.xlane.xlu0 %540  ;;  %2226 = vmatprep.mubr.msk.f32.mxu1 %vm189_vm5, %v550_v19 }
 0x52a   :  { %2432 = vrcp.f32 %v541_v20  ;;  %v2425_v17 = vpop.eup %2424 }
 0x52b   :  { %v552_v29 = vmul.f32 %v2425_v17, %v2839_v47  ;;  %v2876_v47 = vshrl.u32 %v17_v5, 7 }
 0x52d   :  { %v561_v23 = vpop.permute.xlu0 %560  ;;  %v713_v49 = vsub.s32 0, %v2876_v47 }
 0x52e   :  { %2222 = vmatprep.subr.mxu1 %v561_v23 }
 0x52f   :  { %2223 = vmatpush3.msra.mxu1 %v561_v23  ;;  %v2427_v21 = vpop.eup %2426  ;;  %v714_v59 = vrot.slane %v2882_v51, %v713_v49 }
 0x530   :  { %v2429_v31 = vpop.eup %2428  ;;  %v553_v36 = vmul.f32 %v2427_v21, %v2413_v58  ;;  %v157_v21 = vld [vmem:[%s3274_s1 + $0xe0] sm:$0xff] }
 0x531   :  { %v554_v38 = vmul.f32 %v2429_v31, %v2843_v54 }
 0x533   :  { %v2431_v37 = vpop.eup %2430 }
 0x534   :  { %v555_v34 = vmul.f32 %v2431_v37, %v2848_v62 }
 0x537   :  { %v2433_v40 = vpop.eup %2432 }
 0x538   :  { %v557_v46 = vmul.f32 %v2433_v40, %v2852_v2 }
 0x559   :  { %v538_v1 = vpop.xlane.xlu1 %537 }
 0x55a   :  { %2434 = vrcp.f32 %v538_v1 }
 0x55d   :  { %v559_v27 = vpop.permute.xlu1 %558 }
 0x55e   :  { %2224 = vmatprep.subr.mxu1 %v559_v27 }
 0x55f   :  { %2225 = vmatpush3.msra.mxu1 %v559_v27  ;;  %v159_v27 = vld [vmem:[%s3274_s1 + $0xf0] sm:$0xff] }
 0x560   :  { %2227 = vmatmul.mubr.msk.f32.vlgmr.msra.gmra.mxu1 %vm189_vm5, %v551_v28  ;;  %v158_v28 = vld [vmem:[%s3274_s1 + $0xe8] sm:$0xff] }
 0x561   :  { %2229 = vmatprep.mubr.msk.f32.mxu1 %vm189_vm5, %v552_v29 }
 0x564   :  { %2230 = vmatmul.mubr.msk.f32.gmra.mxu1 %vm189_vm5, %v553_v36 }
 0x565   :  { %2232 = vmatprep.mubr.msk.f32.mxu1 %vm189_vm5, %v554_v38 }
 0x567   :  { %v2435_v41 = vpop.eup %2434 }
 0x568   :  { %2233 = vmatmul.mubr.msk.f32.gmra.mxu1 %vm189_vm5, %v555_v34  ;;  %v556_v43 = vmul.f32 %v2435_v41, %v2419_v13  ;;  %v754_v34 = vsub.s32 3, %v2876_v47  ;;  %v760_v41 = vsub.s32 4, %v2876_v47 }
 0x56a   :  { %2235 = vmatprep.mubr.msk.f32.mxu1 %vm189_vm5, %v556_v43  ;;  %v755_v43 = vrot.slane %v2882_v51, %v754_v34 }
 0x56c   :  { %2236 = vmatmul.mubr.msk.f32.gmra.mxu1 %vm189_vm5, %v557_v46 }
 0x620   :  { %v2228_v54 = vpop.f32.mrf.mxu1 }
 0x621   :  { %v716_v63 = vadd.f32 %v2228_v54, %v714_v59 }
 0x622   :  { %v672_v58 = vpop.f32.mrf.mxu1 }
 0x623   :  { %v715_v3 = vadd.f32 %v714_v59, %v672_v58  ;;  %v761_v58 = vrot.slane %v2882_v51, %v760_v41 }
 0x624   :  { %v2231_v61 = vpop.f32.mrf.mxu1 }
 0x625   :  { %v718_v5 = vadd.f32 %v2231_v61, %v716_v63 }
 0x626   :  { %v682_v62 = vpop.f32.mrf.mxu1 }
 0x627   :  { %v717_v6 = vadd.f32 %v715_v3, %v682_v62 }
 0x628   :  { %v2234_v2 = vpop.f32.mrf.mxu1 }
 0x629   :  { %v720_v7 = vadd.f32 %v2234_v2, %v718_v5  ;;  %v164_v5 = vld [vmem:[%s3274_s1 + $0x118] sm:$0xff] }
 0x62a   :  { %v692_v4 = vpop.f32.mrf.mxu1 }
 0x62b   :  { %v719_v11 = vadd.f32 %v717_v6, %v692_v4  ;;  %v163_v4 = vld [vmem:[%s3274_s1 + $0x110] sm:$0xff]  ;;  %v162_v6 = vld [vmem:[%s3274_s1 + $0x108] sm:$0xff] }
 0x62c   :  { %v2237_v10 = vpop.f32.mrf.mxu1 }
 0x62d   :  { %v722_v12 = vadd.f32 %v2237_v10, %v720_v7  ;;  %v161_v7 = vld [vmem:[%s3274_s1 + $0x100] sm:$0xff]  ;;  %v766_v10 = vsub.s32 1, %v2876_v47 }
 0x62e   :  { %v702_v13 = vpop.f32.mrf.mxu1 }
 0x62f   :  { %v721_v14 = vadd.f32 %v719_v11, %v702_v13  ;;  %v724_v22 = vadd.f32 %v722_v12, %v2600_v30  ;;  %v767_v11 = vrot.slane %v2882_v51, %v766_v10 }
 0x631   :  { %v728_v9 = vsel %vm186_vm3, %v724_v22, 0.0  ;;  %v723_v15 = vadd.f32 %v721_v14, %v2605_v33  ;;  %v160_v33 = vld [vmem:[%s3274_s1 + $0xf8] sm:$0xff] }
 0x632   :  { %729 = vadd.xlane.f32.xlu1 %v728_v9  ;;  %2238 = vmatprep.subr.mxu0 %v160_v33 }
 0x633   :  { %v725_v16 = vsel %vm186_vm3, %v723_v15, 0.0  ;;  %2239 = vmatpush3.msra.mxu0 %v160_v33 }
 0x634   :  { %726 = vadd.xlane.f32.xlu0 %v725_v16  ;;  %2240 = vmatprep.subr.mxu0 %v159_v27  ;;  %v853_v16 = vsub.s32 2, %v2876_v47 }
 0x635   :  { %2241 = vmatpush3.msra.mxu0 %v159_v27 }
 0x636   :  { %2242 = vmatprep.subr.mxu0 %v158_v28 }
 0x637   :  { %2243 = vmatpush3.msra.mxu0 %v158_v28 }
 0x638   :  { %2244 = vmatprep.subr.mxu0 %v157_v21 }
 0x639   :  { %2245 = vmatpush3.msra.mxu0 %v157_v21 }
 0x63a   :  { %2249 = vmatprep.subr.mxu0 %v164_v5 }
 0x6bb   :  { %v730_v18 = vpop.xlane.xlu1 %729 }
 0x6bc   :  { %v733_v19 = vmul.f32 0.03125, %v730_v18  ;;  %v854_v18 = vrot.slane %v2882_v51, %v853_v16 }
 0x6bd   :  { %v727_v20 = vpop.xlane.xlu0 %726 }
 0x6be   :  { %v732_v23 = vmul.f32 0.03125, %v727_v20  ;;  %v735_v24 = vsub.f32 %v724_v22, %v733_v19 }
 0x6c0   :  { %v734_v25 = vsub.f32 %v723_v15, %v732_v23  ;;  %v737_v17 = vmul.f32 %v735_v24, %v735_v24 }
 0x6c2   :  { %v736_v1 = vmul.f32 %v734_v25, %v734_v25  ;;  %v741_v30 = vsel %vm186_vm3, %v737_v17, 0.0 }
 0x6c4   :  { %v738_v26 = vsel %vm186_vm3, %v736_v1, 0.0 }
 0x6c5   :  { %739 = vadd.xlane.f32.xlu0 %v738_v26 }
 0x6c9   :  { %742 = vadd.xlane.f32.xlu0 %v741_v30 }
 0x74e   :  { %v740_v29 = vpop.xlane.xlu0 %739 }
 0x74f   :  { %v744_v31 = vmul.f32 0.03125, %v740_v29 }
 0x751   :  { %v746_v36 = vadd.f32 1e-05, %v744_v31 }
 0x752   :  { %v743_v37 = vpop.xlane.xlu0 %742 }
 0x753   :  { %2436 = vrsqrt.f32 %v746_v36  ;;  %v745_v38 = vmul.f32 0.03125, %v743_v37 }
 0x755   :  { %v747_v40 = vadd.f32 1e-05, %v745_v38 }
 0x757   :  { %2438 = vrsqrt.f32 %v747_v40  ;;  %v991_v40 = vld [vmem:[%s3274_s1 + $0x1a0] sm:$0xff] }
 0x758   :  { %2260 = vmatprep.subr.mxu1 %v991_v40 }
 0x759   :  { %2261 = vmatpush3.msra.mxu1 %v991_v40 }
 0x760   :  { %v2437_v46 = vpop.eup %2436 }
 0x761   :  { %v750_v54 = vmul.f32 %v2437_v46, %v734_v25  ;;  %v989_v46 = vld [vmem:[%s3274_s1 + $0x190] sm:$0xff] }
 0x763   :  { %v756_v59 = vmul.f32 %v755_v43, %v750_v54  ;;  %v988_v54 = vld [vmem:[%s3274_s1 + $0x188] sm:$0xff] }
 0x764   :  { %v2439_v61 = vpop.eup %2438 }
 0x765   :  { %v751_v62 = vmul.f32 %v2439_v61, %v735_v24  ;;  %v762_v63 = vadd.f32 %v761_v58, %v756_v59  ;;  %v986_v59 = vld [vmem:[%s3274_s1 + $0x178] sm:$0xff]  ;;  %v985_v61 = vld [vmem:[%s3274_s1 + $0x170] sm:$0xff] }
 0x767   :  { %v757_v2 = vmul.f32 %v755_v43, %v751_v62  ;;  %2246 = vmatprep.mubr.msk.f32.mxu0 %vm186_vm3, %v762_v63  ;;  %v990_v43 = vld [vmem:[%s3274_s1 + $0x198] sm:$0xff]  ;;  %v984_v62 = vld [vmem:[%s3274_s1 + $0x168] sm:$0xff] }
 0x768   :  { %2262 = vmatprep.subr.mxu1 %v990_v43 }
 0x769   :  { %v763_v3 = vadd.f32 %v761_v58, %v757_v2  ;;  %2263 = vmatpush3.msra.mxu1 %v990_v43  ;;  %v987_v58 = vld [vmem:[%s3274_s1 + $0x180] sm:$0xff] }
 0x76a   :  { %2264 = vmatprep.subr.mxu1 %v989_v46 }
 0x76b   :  { %2247 = vmatmul.mubr.msk.f32.vlgmr.msra.gmra.mxu0 %vm186_vm3, %v763_v3  ;;  %2265 = vmatpush3.msra.mxu1 %v989_v46 }
 0x76c   :  { %2250 = vmatpush3.msra.mxu0 %v164_v5  ;;  %2266 = vmatprep.subr.mxu1 %v988_v54 }
 0x76d   :  { %2251 = vmatprep.subr.mxu0 %v163_v4  ;;  %2267 = vmatpush3.msra.mxu1 %v988_v54 }
 0x76e   :  { %2252 = vmatpush3.msra.mxu0 %v163_v4  ;;  %2268 = vmatprep.subr.mxu1 %v987_v58 }
 0x76f   :  { %2253 = vmatprep.subr.mxu0 %v162_v6  ;;  %2269 = vmatpush3.msra.mxu1 %v987_v58 }
 0x770   :  { %2254 = vmatpush3.msra.mxu0 %v162_v6  ;;  %2270 = vmatprep.subr.mxu1 %v986_v59 }
 0x771   :  { %2255 = vmatprep.subr.mxu0 %v161_v7  ;;  %2271 = vmatpush3.msra.mxu1 %v986_v59 }
 0x772   :  { %2256 = vmatpush3.msra.mxu0 %v161_v7  ;;  %2272 = vmatprep.subr.mxu1 %v985_v61 }
 0x773   :  { %2273 = vmatpush3.msra.mxu1 %v985_v61 }
 0x774   :  { %2274 = vmatprep.subr.mxu1 %v984_v62 }
 0x775   :  { %2275 = vmatpush3.msra.mxu1 %v984_v62 }
 0x82b   :  { %v2248_v12 = vpop.f32.mrf.mxu0 }
 0x82c   :  { %v846_v13 = vadd.f32 %v2248_v12, %v767_v11  ;;  %v982_v12 = vld [vmem:[%s3274_s1 + $0x158] sm:$0xff] }
 0x82d   :  { %v840_v14 = vpop.f32.mrf.mxu0 }
 0x82e   :  { %v841_v22 = vadd.f32 %v840_v14, %v767_v11  ;;  %v850_v15 = vmax.f32 %v846_v13, 0.0  ;;  %v966_v11 = vsub.s32 5, %v2876_v47  ;;  %v981_v13 = vld [vmem:[%s3274_s1 + $0x150] sm:$0xff]  ;;  %v972_v14 = vsub.s32 6, %v2876_v47 }
 0x830   :  { %v849_v9 = vmax.f32 %v841_v22, 0.0  ;;  %v980_v22 = vld [vmem:[%s3274_s1 + $0x148] sm:$0xff] }
 0x832   :  { %2257 = vmatprep.mubr.msk.f32.mxu0 %vm186_vm3, %v849_v9  ;;  %v967_v9 = vrot.slane %v2882_v51, %v966_v11 }
 0x833   :  { %2258 = vmatmul.mubr.msk.f32.vlgmr.msra.gmra.mxu0 %vm186_vm3, %v850_v15  ;;  %v979_v15 = vld [vmem:[%s3274_s1 + $0x140] sm:$0xff] }
 0x8f3   :  { %v2259_v19 = vpop.f32.mrf.mxu0 }
 0x8f4   :  { %v933_v20 = vadd.f32 %v2259_v19, %v854_v18 }
 0x8f5   :  { %v927_v23 = vpop.f32.mrf.mxu0 }
 0x8f6   :  { %v928_v24 = vadd.f32 %v927_v23, %v854_v18  ;;  %v937_v25 = vadd.f32 %v933_v20, %v763_v3  ;;  %v973_v20 = vrot.slane %v2882_v51, %v972_v14  ;;  %v976_v51 = vld [vmem:[%s3274_s1 + $0x128] sm:$0xff] }
 0x8f8   :  { %v941_v1 = vsel %vm186_vm3, %v937_v25, 0.0  ;;  %v936_v26 = vadd.f32 %v928_v24, %v762_v63  ;;  %v983_v63 = vld [vmem:[%s3274_s1 + $0x160] sm:$0xff] }
 0x8f9   :  { %942 = vadd.xlane.f32.xlu0 %v941_v1  ;;  %2276 = vmatprep.subr.mxu1 %v983_v63  ;;  %v978_v1 = vld [vmem:[%s3274_s1 + $0x138] sm:$0xff] }
 0x8fa   :  { %v938_v17 = vsel %vm186_vm3, %v936_v26, 0.0  ;;  %2277 = vmatpush3.msra.mxu1 %v983_v63 }
 0x8fb   :  { %939 = vadd.xlane.f32.xlu1 %v938_v17  ;;  %2278 = vmatprep.subr.mxu1 %v982_v12 }
 0x8fc   :  { %2279 = vmatpush3.msra.mxu1 %v982_v12 }
 0x8fd   :  { %2280 = vmatprep.subr.mxu1 %v981_v13 }
 0x8fe   :  { %2281 = vmatpush3.msra.mxu1 %v981_v13  ;;  %v997_v13 = vld [vmem:[%s3274_s1 + $0x1d0] sm:$0xff] }
 0x8ff   :  { %2282 = vmatprep.subr.mxu1 %v980_v22 }
 0x900   :  { %2283 = vmatpush3.msra.mxu1 %v980_v22 }
 0x901   :  { %2284 = vmatprep.subr.mxu1 %v979_v15 }
 0x902   :  { %2285 = vmatpush3.msra.mxu1 %v979_v15  ;;  %v996_v15 = vld [vmem:[%s3274_s1 + $0x1c8] sm:$0xff] }
 0x903   :  { %2286 = vmatprep.subr.mxu1 %v978_v1 }
 0x904   :  { %2287 = vmatpush3.msra.mxu1 %v978_v1 }
 0x982   :  { %v943_v30 = vpop.xlane.xlu0 %942 }
 0x983   :  { %v945_v33 = vmul.f32 0.03125, %v943_v30 }
 0x984   :  { %v940_v27 = vpop.xlane.xlu1 %939 }
 0x985   :  { %v947_v28 = vsub.f32 %v937_v25, %v945_v33  ;;  %v944_v21 = vmul.f32 0.03125, %v940_v27 }
 0x987   :  { %v946_v29 = vsub.f32 %v936_v26, %v944_v21  ;;  %v949_v31 = vmul.f32 %v947_v28, %v947_v28  ;;  %v977_v26 = vld [vmem:[%s3274_s1 + $0x130] sm:$0xff] }
 0x988   :  { %2288 = vmatprep.subr.mxu1 %v977_v26 }
 0x989   :  { %v953_v36 = vsel %vm186_vm3, %v949_v31, 0.0  ;;  %v948_v37 = vmul.f32 %v946_v29, %v946_v29  ;;  %2289 = vmatpush3.msra.mxu1 %v977_v26 }
 0x98a   :  { %954 = vadd.xlane.f32.xlu0 %v953_v36  ;;  %2290 = vmatprep.subr.mxu1 %v976_v51 }
 0x98b   :  { %v950_v38 = vsel %vm186_vm3, %v948_v37, 0.0  ;;  %2291 = vmatpush3.msra.mxu1 %v976_v51 }
 0x98c   :  { %951 = vadd.xlane.f32.xlu1 %v950_v38 }
 0xa13   :  { %v955_v2 = vpop.xlane.xlu0 %954 }
 0xa14   :  { %v957_v3 = vmul.f32 0.03125, %v955_v2 }
 0xa15   :  { %v952_v5 = vpop.xlane.xlu1 %951 }
 0xa16   :  { %v959_v4 = vadd.f32 1e-05, %v957_v3  ;;  %v956_v6 = vmul.f32 0.03125, %v952_v5 }
 0xa18   :  { %2440 = vrsqrt.f32 %v959_v4  ;;  %v958_v7 = vadd.f32 1e-05, %v956_v6 }
 0xa1a   :  { %2442 = vrsqrt.f32 %v958_v7  ;;  %v998_v7 = vld [vmem:[%s3274_s1 + $0x1d8] sm:$0xff] }
 0xa25   :  { %v2441_v18 = vpop.eup %2440 }
 0xa26   :  { %v963_v19 = vmul.f32 %v2441_v18, %v947_v28 }
 0xa27   :  { %v2443_v23 = vpop.eup %2442 }
 0xa28   :  { %v962_v24 = vmul.f32 %v2443_v23, %v946_v29  ;;  %v969_v25 = vmul.f32 %v967_v9, %v963_v19  ;;  %v995_v19 = vld [vmem:[%s3274_s1 + $0x1c0] sm:$0xff]  ;;  %v994_v23 = vld [vmem:[%s3274_s1 + $0x1b8] sm:$0xff] }
 0xa2a   :  { %v2994_v17 = vadd.f32 %v973_v20, %v969_v25  ;;  %v968_v30 = vmul.f32 %v967_v9, %v962_v24  ;;  %v993_v25 = vld [vmem:[%s3274_s1 + $0x1b0] sm:$0xff] }
 0xa2c   :  { %1013 = vrot.lane.b32.xlu0 %v2994_v17, %s2508_s27  ;;  %1019 = vrot.lane.b32.xlu1 %v2994_v17, %s2509_s28  ;;  %v3003_v33 = vadd.f32 %v973_v20, %v968_v30 }
 0xa30   :  { %1023 = vrot.lane.b32.xlu0 %v3003_v33, %s2510_s29  ;;  %1011 = vrot.lane.b32.xlu1 %v3003_v33, %s2508_s27 }
 0xa34   :  { %1017 = vrot.lane.b32.xlu1 %v3003_v33, %s2509_s28 }
 0xa38   :  { %1025 = vrot.lane.b32.xlu1 %v2994_v17, %s2510_s29 }
 0xa9e   :  { %v1020_v27 = vpop.permute.xlu1 %1019  ;;  %v1014_v28 = vpop.permute.xlu0 %1013 }
 0xa9f   :  { %v1030_v36 = vsel %vm186_vm3, %v2994_v17, %v1014_v28 }
 0xaa0   :  { %v1032_v46 = vsel %vm189_vm5, %v1030_v36, %v1020_v27 }
 0xaa2   :  { %v1012_v21 = vpop.permute.xlu1 %1011  ;;  %v1024_v37 = vpop.permute.xlu0 %1023 }
 0xaa3   :  { %v1029_v29 = vsel %vm186_vm3, %v3003_v33, %v1012_v21 }
 0xaa6   :  { %v1018_v31 = vpop.permute.xlu1 %1017 }
 0xaa7   :  { %v1031_v38 = vsel %vm189_vm5, %v1029_v29, %v1018_v31 }
 0xaa8   :  { %v1033_v40 = vsel %vm192_vm4, %v1031_v38, %v1024_v37 }
 0xaa9   :  { %v1035_v43 = vmul.f32 %v1033_v40, %v2624_v39  ;;  %v1037_v61 = vmul.f32 %v1033_v40, %v2640_v48  ;;  %v1039_v63 = vmul.f32 %v1033_v40, %v2653_v53  ;;  %v1041_v2 = vmul.f32 %v1033_v40, %v2665_v57  ;;  %v992_v48 = vld [vmem:[%s3274_s1 + $0x1a8] sm:$0xff] }
 0xaaa   :  { %v1026_v54 = vpop.permute.xlu1 %1025 }
 0xaab   :  { %v1034_v58 = vsel %vm192_vm4, %v1032_v46, %v1026_v54  ;;  %2292 = vmatprep.mubr.f32.mxu1 %v1035_v43 }
 0xaac   :  { %v1036_v59 = vmul.f32 %v1034_v58, %v2633_v44  ;;  %v1038_v62 = vmul.f32 %v1034_v58, %v2648_v52  ;;  %v1040_v39 = vmul.f32 %v1034_v58, %v2660_v56  ;;  %v1042_v3 = vmul.f32 %v1034_v58, %v2672_v60  ;;  %v999_v60 = vld [vmem:[%s3274_s1 + $0x1e0] sm:$0xff] }
 0xaae   :  { %2293 = vmatmul.mubr.f32.vlgmr.msra.gmra.mxu1 %v1036_v59 }
 0xaaf   :  { %2295 = vmatprep.mubr.f32.mxu1 %v1037_v61 }
 0xab2   :  { %2296 = vmatmul.mubr.f32.gmra.mxu1 %v1038_v62 }
 0xab3   :  { %2298 = vmatprep.mubr.f32.mxu1 %v1039_v63 }
 0xab6   :  { %2299 = vmatmul.mubr.f32.gmra.mxu1 %v1040_v39 }
 0xab7   :  { %2301 = vmatprep.mubr.f32.mxu1 %v1041_v2 }
 0xaba   :  { %2302 = vmatmul.mubr.f32.gmra.mxu1 %v1042_v3 }
 0xb6e   :  { %v2294_v44 = vpop.f32.mrf.mxu1 }
 0xb6f   :  { %v3079_v26 = vadd.f32 %v2294_v44, %v993_v25 }
 0xb70   :  { %v1109_v5 = vpop.f32.mrf.mxu1 }
 0xb71   :  { %v3032_v52 = vadd.f32 %v1109_v5, %v992_v48 }
 0xb72   :  { %v2297_v53 = vpop.f32.mrf.mxu1 }
 0xb73   :  { %2320 = vmatprep.mubr.msk.f32.mxu0 %vm332_vm6, %v3032_v52  ;;  %v3068_v24 = vadd.f32 %v2297_v53, %v995_v19 }
 0xb74   :  { %v1119_v56 = vpop.f32.mrf.mxu1 }
 0xb75   :  { %v3075_v1 = vadd.f32 %v1119_v56, %v994_v23 }
 0xb76   :  { %v2300_v4 = vpop.f32.mrf.mxu1 }
 0xb77   :  { %v3054_v18 = vadd.f32 %v2300_v4, %v997_v13 }
 0xb78   :  { %v1129_v57 = vpop.f32.mrf.mxu1 }
 0xb79   :  { %v3061_v20 = vadd.f32 %v1129_v57, %v996_v15 }
 0xb7a   :  { %v2303_v6 = vpop.f32.mrf.mxu1 }
 0xb7b   :  { %v3042_v12 = vadd.f32 %v2303_v6, %v999_v60 }
 0xb7c   :  { %v1139_v22 = vpop.f32.mrf.mxu1 }
 0xb7d   :  { %v3047_v9 = vadd.f32 %v1139_v22, %v998_v7  ;;  %1170 = vrot.lane.b32.xlu0 %v3042_v12, %s2511_s26 }
 0xb7f   :  { %1168 = vrot.lane.b32.xlu1 %v3047_v9, %s2511_s26 }
 0xb81   :  { %1166 = vrot.lane.b32.xlu0 %v3054_v18, %s2511_s26 }
 0xb83   :  { %1164 = vrot.lane.b32.xlu1 %v3061_v20, %s2511_s26 }
 0xb85   :  { %1162 = vrot.lane.b32.xlu0 %v3068_v24, %s2511_s26 }
 0xb87   :  { %1160 = vrot.lane.b32.xlu1 %v3075_v1, %s2511_s26 }
 0xb89   :  { %1158 = vrot.lane.b32.xlu0 %v3079_v26, %s2511_s26 }
 0xb8b   :  { %1156 = vrot.lane.b32.xlu1 %v3032_v52, %s2511_s26  ;;  %s1911_s26 = sshll.u32 %s2513_s20, 4  ;;  %s1912_s26 = int_to_ptr.vmem [resolvable:$true] %s1911_s26 }
 0xb8c   :  { %p2489_p1 = scmp.lt.s32.totalorder %s1912_s26, %s1912_s26 }
 0xbef   :  { %v1171_v30 = vpop.permute.xlu0 %1170 }
 0xbf0   :  { %2304 = vmatprep.subr.msk.mxu0 %vm332_vm6, %v1171_v30 }
 0xbf1   :  { %2305 = vmatpush3.xpose.msk.msra.mxu0 %vm332_vm6, %v1171_v30  ;;  %v1169_v51 = vpop.permute.xlu1 %1168 }
 0xbf2   :  { %2306 = vmatprep.subr.msk.mxu0 %vm332_vm6, %v1169_v51 }
 0xbf3   :  { %v1167_v27 = vpop.permute.xlu0 %1166 }
 0xbf5   :  { %2307 = vmatpush3.xpose.msk.msra.mxu0 %vm332_vm6, %v1169_v51  ;;  %v1165_v28 = vpop.permute.xlu1 %1164 }
 0xbf6   :  { %2308 = vmatprep.subr.msk.mxu0 %vm332_vm6, %v1167_v27 }
 0xbf7   :  { %v1163_v21 = vpop.permute.xlu0 %1162 }
 0xbf9   :  { %2309 = vmatpush3.xpose.msk.msra.mxu0 %vm332_vm6, %v1167_v27  ;;  %v1161_v29 = vpop.permute.xlu1 %1160 }
 0xbfa   :  { %2310 = vmatprep.subr.msk.mxu0 %vm332_vm6, %v1165_v28 }
 0xbfb   :  { %v1159_v31 = vpop.permute.xlu0 %1158 }
 0xbfd   :  { %2311 = vmatpush3.xpose.msk.msra.mxu0 %vm332_vm6, %v1165_v28  ;;  %v1157_v36 = vpop.permute.xlu1 %1156 }
 0xbfe   :  { %2312 = vmatprep.subr.msk.mxu0 %vm332_vm6, %v1163_v21 }
 0xc01   :  { %2313 = vmatpush3.xpose.msk.msra.mxu0 %vm332_vm6, %v1163_v21 }
 0xc02   :  { %2314 = vmatprep.subr.msk.mxu0 %vm332_vm6, %v1161_v29 }
 0xc05   :  { %2315 = vmatpush3.xpose.msk.msra.mxu0 %vm332_vm6, %v1161_v29 }
 0xc06   :  { %2316 = vmatprep.subr.msk.mxu0 %vm332_vm6, %v1159_v31 }
 0xc09   :  { %2317 = vmatpush3.xpose.msk.msra.mxu0 %vm332_vm6, %v1159_v31 }
 0xc0a   :  { %2318 = vmatprep.subr.msk.mxu0 %vm332_vm6, %v1157_v36 }
 0xc0d   :  { %2319 = vmatpush3.xpose.msk.msra.mxu0 %vm332_vm6, %v1157_v36 }
 0xc10   :  { %2321 = vmatmul.mubr.msk.f32.vlgmr.msra.gmra.mxu0 %vm332_vm6, %v3079_v26 }
 0xc11   :  { %2323 = vmatprep.mubr.msk.f32.mxu0 %vm332_vm6, %v3075_v1 }
 0xc14   :  { %2324 = vmatmul.mubr.msk.f32.gmra.mxu0 %vm332_vm6, %v3068_v24 }
 0xc15   :  { %2326 = vmatprep.mubr.msk.f32.mxu0 %vm332_vm6, %v3061_v20 }
 0xc18   :  { %2327 = vmatmul.mubr.msk.f32.gmra.mxu0 %vm332_vm6, %v3054_v18 }
 0xc19   :  { %2329 = vmatprep.mubr.msk.f32.mxu0 %vm332_vm6, %v3047_v9 }
 0xc1c   :  { %2330 = vmatmul.mubr.msk.f32.gmra.mxu0 %vm332_vm6, %v3042_v12 }
 0xcd0   :  { %v2322_v37 = vpop.f32.mrf.mxu0 }
 0xcd1   :  { %v1276_v38 = vadd.f32 %v2322_v37, %v2766_v32 }
 0xcd2   :  { %v1270_v40 = vpop.f32.mrf.mxu0 }
 0xcd3   :  { %v1271_v43 = vadd.f32 %v1270_v40, %v2771_v35  ;;  %v1312_v46 = vsel %vm189_vm5, %v1276_v38, -inf }
 0xcd4   :  { %1313 = vmax.xlane.f32.xlu1 %v1312_v46  ;;  %v2325_v54 = vpop.f32.mrf.mxu0 }
 0xcd5   :  { %v1309_v58 = vsel %vm189_vm5, %v1271_v43, -inf  ;;  %v1286_v63 = vadd.f32 %v2325_v54, %v2785_v45 }
 0xcd6   :  { %v1280_v59 = vpop.f32.mrf.mxu0  ;;  %1310 = vmax.xlane.f32.xlu0 %v1309_v58 }
 0xcd7   :  { %v1281_v61 = vadd.f32 %v1280_v59, %v2779_v42  ;;  %v1318_v44 = vsel %vm189_vm5, %v1286_v63, -inf }
 0xcd8   :  { %v2328_v62 = vpop.f32.mrf.mxu0 }
 0xcd9   :  { %v1315_v39 = vsel %vm189_vm5, %v1281_v61, -inf  ;;  %v1296_v35 = vadd.f32 %v2328_v62, %v2798_v55 }
 0xcda   :  { %v1290_v2 = vpop.f32.mrf.mxu0  ;;  %1316 = vmax.xlane.f32.xlu0 %v1315_v39 }
 0xcdb   :  { %v1291_v32 = vadd.f32 %v1290_v2, %v2791_v50  ;;  %v1324_v5 = vsel %vm189_vm5, %v1296_v35, -inf }
 0xcdc   :  { %v2331_v48 = vpop.f32.mrf.mxu0 }
 0xcdd   :  { %v1321_v3 = vsel %vm189_vm5, %v1291_v32, -inf  ;;  %v1306_v42 = vadd.f32 %v2331_v48, %v2807_v0 }
 0xcde   :  { %1322 = vmax.xlane.f32.xlu1 %v1321_v3  ;;  %1319 = vmax.xlane.f32.xlu0 %v1318_v44  ;;  %v1300_v50 = vpop.f32.mrf.mxu0 }
 0xcdf   :  { %v1330_v45 = vsel %vm189_vm5, %v1306_v42, -inf  ;;  %v3140_v55 = vadd.f32 %v1300_v50, %v2823_v8 }
 0xce1   :  { %v1327_v0 = vsel %vm189_vm5, %v3140_v55, -inf }
 0xce2   :  { %1325 = vmax.xlane.f32.xlu0 %v1324_v5 }
 0xce6   :  { %1331 = vmax.xlane.f32.xlu0 %v1330_v45 }
 0xcef   :  { %1411 = vrot.lane.b32.xlu1 %v3042_v12, %s2512_s24 }
 0xcf3   :  { %1407 = vrot.lane.b32.xlu1 %v3054_v18, %s2512_s24 }
 0xcfc   :  { %1409 = vrot.lane.b32.xlu0 %v3047_v9, %s2512_s24 }
 0xd00   :  { %1403 = vrot.lane.b32.xlu0 %v3068_v24, %s2512_s24 }
 0xd17   :  { %1328 = vmax.xlane.f32.xlu1 %v1327_v0 }
 0xd28   :  { %1405 = vrot.lane.b32.xlu1 %v3061_v20, %s2512_s24 }
 0xd2c   :  { %1401 = vrot.lane.b32.xlu1 %v3075_v1, %s2512_s24 }
 0xd5d   :  { %v1314_v53 = vpop.xlane.xlu1 %1313 }
 0xd5e   :  { %v1334_v56 = vsub.f32 %v1276_v38, %v1314_v53 }
 0xd5f   :  { %v1311_v4 = vpop.xlane.xlu0 %1310 }
 0xd60   :  { %v1343_v57 = vmul.f32 1.442695, %v1334_v56  ;;  %v1333_v60 = vsub.f32 %v1271_v43, %v1311_v4 }
 0xd62   :  { %2444 = vpow2.f32 %v1343_v57  ;;  %v1341_v6 = vmul.f32 1.442695, %v1333_v60 }
 0xd63   :  { %v1317_v7 = vpop.xlane.xlu0 %1316 }
 0xd64   :  { %2446 = vpow2.f32 %v1341_v6  ;;  %v1335_v8 = vsub.f32 %v1281_v61, %v1317_v7 }
 0xd66   :  { %v1345_v12 = vmul.f32 1.442695, %v1335_v8 }
 0xd67   :  { %v1323_v13 = vpop.xlane.xlu1 %1322  ;;  %v1320_v22 = vpop.xlane.xlu0 %1319 }
 0xd68   :  { %2448 = vpow2.f32 %v1345_v12  ;;  %v1337_v9 = vsub.f32 %v1291_v32, %v1323_v13  ;;  %v1336_v15 = vsub.f32 %v1286_v63, %v1320_v22 }
 0xd6a   :  { %v1349_v18 = vmul.f32 1.442695, %v1337_v9  ;;  %v1347_v19 = vmul.f32 1.442695, %v1336_v15 }
 0xd6b   :  { %v1412_v20 = vpop.permute.xlu1 %1411  ;;  %v1326_v23 = vpop.xlane.xlu0 %1325 }
 0xd6c   :  { %2450 = vpow2.f32 %v1349_v18  ;;  %v1338_v24 = vsub.f32 %v1296_v35, %v1326_v23  ;;  %2332 = vmatprep.subr.mxu1 %v1412_v20 }
 0xd6d   :  { %2452 = vpow2.f32 %v1347_v19  ;;  %2333 = vmatpush3.msra.mxu1 %v1412_v20 }
 0xd6e   :  { %v1351_v25 = vmul.f32 1.442695, %v1338_v24 }
 0xd6f   :  { %v3148_v1 = vpop.eup %2444  ;;  %v1332_v30 = vpop.xlane.xlu0 %1331 }
 0xd70   :  { %2454 = vpow2.f32 %v1351_v25  ;;  %v1340_v51 = vsub.f32 %v1306_v42, %v1332_v30  ;;  %v1360_v27 = vsel %vm189_vm5, %v3148_v1, 0.0  ;;  %v1408_v37 = vpop.permute.xlu1 %1407  ;;  %v3192_v25 = vld [vmem:[%s3274_s1 + $0x228] sm:$0xff] }
 0xd71   :  { %v2447_v28 = vpop.eup %2446  ;;  %1361 = vadd.xlane.f32.xlu0 %v1360_v27 }
 0xd72   :  { %v1355_v21 = vmul.f32 1.442695, %v1340_v51  ;;  %v1357_v29 = vsel %vm189_vm5, %v2447_v28, 0.0  ;;  %v1553_v51 = vrot.slane %v3192_v25, %v713_v49 }
 0xd73   :  { %1358 = vadd.xlane.f32.xlu1 %v1357_v29  ;;  %v1410_v31 = vpop.permute.xlu0 %1409 }
 0xd74   :  { %2456 = vpow2.f32 %v1355_v21  ;;  %2334 = vmatprep.subr.mxu1 %v1410_v31 }
 0xd75   :  { %v3153_v36 = vpop.eup %2448  ;;  %2335 = vmatpush3.msra.mxu1 %v1410_v31 }
 0xd76   :  { %2336 = vmatprep.subr.mxu1 %v1408_v37  ;;  %v1363_v38 = vsel %vm189_vm5, %v3153_v36, 0.0 }
 0xd77   :  { %1364 = vadd.xlane.f32.xlu1 %v1363_v38  ;;  %2337 = vmatpush3.msra.mxu1 %v1408_v37  ;;  %v1404_v35 = vpop.permute.xlu0 %1403 }
 0xd79   :  { %v3157_v40 = vpop.eup %2450 }
 0xd7a   :  { %v2453_v43 = vpop.eup %2452  ;;  %v1369_v46 = vsel %vm189_vm5, %v3157_v40, 0.0 }
 0xd7b   :  { %1370 = vadd.xlane.f32.xlu1 %v1369_v46  ;;  %v1366_v54 = vsel %vm189_vm5, %v2453_v43, 0.0 }
 0xd7c   :  { %1367 = vadd.xlane.f32.xlu0 %v1366_v54 }
 0xd7d   :  { %v3162_v58 = vpop.eup %2454 }
 0xd7e   :  { %v1372_v59 = vsel %vm189_vm5, %v3162_v58, 0.0 }
 0xd80   :  { %1373 = vadd.xlane.f32.xlu0 %v1372_v59 }
 0xd81   :  { %v3166_v61 = vpop.eup %2456 }
 0xd82   :  { %v1378_v62 = vsel %vm189_vm5, %v3166_v61, 0.0 }
 0xd84   :  { %1379 = vadd.xlane.f32.xlu0 %v1378_v62 }
 0xd9a   :  { %1399 = vrot.lane.b32.xlu0 %v3079_v26, %s2512_s24 }
 0xda0   :  { %v1329_v63 = vpop.xlane.xlu1 %1328 }
 0xda1   :  { %v1339_v39 = vsub.f32 %v3140_v55, %v1329_v63 }
 0xda3   :  { %v1353_v2 = vmul.f32 1.442695, %v1339_v39 }
 0xda4   :  { %v1406_v32 = vpop.permute.xlu1 %1405 }
 0xda5   :  { %2458 = vpow2.f32 %v1353_v2  ;;  %2338 = vmatprep.subr.mxu1 %v1406_v32 }
 0xda6   :  { %2339 = vmatpush3.msra.mxu1 %v1406_v32 }
 0xda7   :  { %2340 = vmatprep.subr.mxu1 %v1404_v35 }
 0xda8   :  { %v1402_v3 = vpop.permute.xlu1 %1401  ;;  %2341 = vmatpush3.msra.mxu1 %v1404_v35 }
 0xda9   :  { %2342 = vmatprep.subr.mxu1 %v1402_v3 }
 0xdaa   :  { %2343 = vmatpush3.msra.mxu1 %v1402_v3 }
 0xdb2   :  { %v2459_v44 = vpop.eup %2458 }
 0xdb3   :  { %v1375_v48 = vsel %vm189_vm5, %v2459_v44, 0.0 }
 0xdb4   :  { %1376 = vadd.xlane.f32.xlu1 %v1375_v48 }
 0xdc5   :  { %1397 = vrot.lane.b32.xlu1 %v3032_v52, %s2512_s24  ;;  %s2484_s24 = scalar_lea.vmem %s1912_s26, 256 }
 0xdc6   :  { %p2485_p0 = scmp.ne.s32.totalorder %s1912_s26, %s2484_s24  ;;  %p2490_p2 = scmp.lt.s32.totalorder %s2484_s24, %s2484_s24 }
 0xdc8   :  { %p2491_p3 = por %p2490_p2, %p2489_p1 }
 0xdca   :  { %p2492_p4 = pnand %p2491_p3, %p2485_p0 }
 0xdfa   :  { %v1362_v42 = vpop.xlane.xlu0 %1361 }
 0xdfc   :  { %v1359_v26 = vpop.xlane.xlu1 %1358 }
 0xdfd   :  { %2460 = vrcp.f32 %v1359_v26 }
 0xdfe   :  { %2462 = vrcp.f32 %v1362_v42 }
 0xe00   :  { %v1365_v56 = vpop.xlane.xlu1 %1364 }
 0xe01   :  { %2464 = vrcp.f32 %v1365_v56 }
 0xe04   :  { %v1371_v4 = vpop.xlane.xlu1 %1370 }
 0xe05   :  { %v1368_v5 = vpop.xlane.xlu0 %1367 }
 0xe06   :  { %2466 = vrcp.f32 %v1368_v5  ;;  %v1002_v5 = vld [vmem:[%s3274_s1 + $0x1f8] sm:$0xff] }
 0xe07   :  { %2468 = vrcp.f32 %v1371_v4 }
 0xe09   :  { %v1374_v45 = vpop.xlane.xlu0 %1373 }
 0xe0a   :  { %v2461_v50 = vpop.eup %2460  ;;  %2470 = vrcp.f32 %v1374_v45  ;;  %v1001_v45 = vld [vmem:[%s3274_s1 + $0x1f0] sm:$0xff] }
 0xe0b   :  { %v1389_v55 = vmul.f32 %v2461_v50, %v2447_v28  ;;  %v2463_v57 = vpop.eup %2462  ;;  %v1000_v50 = vld [vmem:[%s3274_s1 + $0x1e8] sm:$0xff] }
 0xe0c   :  { %v1390_v7 = vmul.f32 %v2463_v57, %v3148_v1 }
 0xe0d   :  { %v1380_v0 = vpop.xlane.xlu0 %1379  ;;  %2348 = vmatprep.mubr.msk.f32.mxu1 %vm189_vm5, %v1389_v55  ;;  %v1007_v55 = vld [vmem:[%s3274_s1 + $0x220] sm:$0xff] }
 0xe0e   :  { %2472 = vrcp.f32 %v1380_v0  ;;  %v2465_v60 = vpop.eup %2464  ;;  %v1006_v0 = vld [vmem:[%s3274_s1 + $0x218] sm:$0xff] }
 0xe0f   :  { %v1391_v12 = vmul.f32 %v2465_v60, %v3153_v36 }
 0xe11   :  { %v1400_v53 = vpop.permute.xlu0 %1399 }
 0xe12   :  { %2344 = vmatprep.subr.mxu1 %v1400_v53 }
 0xe13   :  { %2345 = vmatpush3.msra.mxu1 %v1400_v53  ;;  %v2467_v8 = vpop.eup %2466 }
 0xe14   :  { %v2469_v13 = vpop.eup %2468  ;;  %v1392_v22 = vmul.f32 %v2467_v8, %v2453_v43 }
 0xe15   :  { %v1393_v15 = vmul.f32 %v2469_v13, %v3157_v40 }
 0xe17   :  { %v2471_v9 = vpop.eup %2470 }
 0xe18   :  { %v1394_v19 = vmul.f32 %v2471_v9, %v3162_v58 }
 0xe1b   :  { %v2473_v18 = vpop.eup %2472 }
 0xe1c   :  { %v1396_v24 = vmul.f32 %v2473_v18, %v3166_v61 }
 0xe3d   :  { %v1377_v52 = vpop.xlane.xlu1 %1376 }
 0xe3e   :  { %2474 = vrcp.f32 %v1377_v52 }
 0xe41   :  { %v1398_v6 = vpop.permute.xlu1 %1397 }
 0xe42   :  { %2346 = vmatprep.subr.mxu1 %v1398_v6 }
 0xe43   :  { %2347 = vmatpush3.msra.mxu1 %v1398_v6  ;;  %v1593_v6 = vrot.slane %v3192_v25, %v754_v34  ;;  %v1005_v34 = vld [vmem:[%s3274_s1 + $0x210] sm:$0xff] }
 0xe44   :  { %2349 = vmatmul.mubr.msk.f32.vlgmr.msra.gmra.mxu1 %vm189_vm5, %v1390_v7  ;;  %2371 = vmatprep.subr.mxu1 %v1007_v55 }
 0xe45   :  { %2351 = vmatprep.mubr.msk.f32.mxu1 %vm189_vm5, %v1391_v12  ;;  %2372 = vmatpush3.msra.mxu1 %v1007_v55  ;;  %v1599_v12 = vrot.slane %v3192_v25, %v760_v41  ;;  %v1004_v41 = vld [vmem:[%s3274_s1 + $0x208] sm:$0xff] }
 0xe46   :  { %2373 = vmatprep.subr.mxu1 %v1006_v0 }
 0xe47   :  { %2374 = vmatpush3.msra.mxu1 %v1006_v0 }
 0xe48   :  { %2352 = vmatmul.mubr.msk.f32.gmra.mxu1 %vm189_vm5, %v1392_v22  ;;  %2375 = vmatprep.subr.mxu1 %v1005_v34 }
 0xe49   :  { %2354 = vmatprep.mubr.msk.f32.mxu1 %vm189_vm5, %v1393_v15  ;;  %2376 = vmatpush3.msra.mxu1 %v1005_v34 }
 0xe4a   :  { %2377 = vmatprep.subr.mxu1 %v1004_v41 }
 0xe4b   :  { %v2475_v20 = vpop.eup %2474  ;;  %2378 = vmatpush3.msra.mxu1 %v1004_v41 }
 0xe4c   :  { %2355 = vmatmul.mubr.msk.f32.gmra.mxu1 %vm189_vm5, %v1394_v19  ;;  %v1395_v23 = vmul.f32 %v2475_v20, %v2459_v44  ;;  %v1605_v20 = vrot.slane %v3192_v25, %v766_v10 }
 0xe4e   :  { %2357 = vmatprep.mubr.msk.f32.mxu1 %vm189_vm5, %v1395_v23 }
 0xe50   :  { %2358 = vmatmul.mubr.msk.f32.gmra.mxu1 %vm189_vm5, %v1396_v24 }
 0xf04   :  { %v2350_v1 = vpop.f32.mrf.mxu1 }
 0xf05   :  { %v1555_v21 = vadd.f32 %v2350_v1, %v1553_v51 }
 0xf06   :  { %v1511_v30 = vpop.f32.mrf.mxu1 }
 0xf07   :  { %v1554_v31 = vadd.f32 %v1553_v51, %v1511_v30 }
 0xf08   :  { %v2353_v27 = vpop.f32.mrf.mxu1 }
 0xf09   :  { %v1557_v36 = vadd.f32 %v2353_v27, %v1555_v21 }
 0xf0a   :  { %v1521_v28 = vpop.f32.mrf.mxu1 }
 0xf0b   :  { %v1556_v38 = vadd.f32 %v1554_v31, %v1521_v28  ;;  %v1692_v28 = vrot.slane %v3192_v25, %v853_v16 }
 0xf0c   :  { %v2356_v29 = vpop.f32.mrf.mxu1 }
 0xf0d   :  { %v1559_v40 = vadd.f32 %v2356_v29, %v1557_v36 }
 0xf0e   :  { %v1531_v37 = vpop.f32.mrf.mxu1 }
 0xf0f   :  { %v1558_v46 = vadd.f32 %v1556_v38, %v1531_v37 }
 0xf10   :  { %v2359_v43 = vpop.f32.mrf.mxu1 }
 0xf11   :  { %v1561_v54 = vadd.f32 %v2359_v43, %v1559_v40 }
 0xf12   :  { %v1541_v58 = vpop.f32.mrf.mxu1 }
 0xf13   :  { %v1560_v59 = vadd.f32 %v1558_v46, %v1541_v58  ;;  %v1563_v61 = vadd.f32 %v1561_v54, %v2994_v17 }
 0xf15   :  { %v1567_v62 = vsel %vm186_vm3, %v1563_v61, 0.0  ;;  %v1562_v49 = vadd.f32 %v1560_v59, %v3003_v33  ;;  %v1003_v33 = vld [vmem:[%s3274_s1 + $0x200] sm:$0xff] }
 0xf16   :  { %1568 = vadd.xlane.f32.xlu1 %v1567_v62  ;;  %2360 = vmatprep.subr.mxu0 %v1003_v33 }
 0xf17   :  { %v1564_v63 = vsel %vm186_vm3, %v1562_v49, 0.0  ;;  %2361 = vmatpush3.msra.mxu0 %v1003_v33 }
 0xf18   :  { %1565 = vadd.xlane.f32.xlu0 %v1564_v63  ;;  %2362 = vmatprep.subr.mxu0 %v1002_v5 }
 0xf19   :  { %2363 = vmatpush3.msra.mxu0 %v1002_v5  ;;  %v1805_v5 = vrot.slane %v3192_v25, %v966_v11 }
 0xf1a   :  { %2364 = vmatprep.subr.mxu0 %v1001_v45 }
 0xf1b   :  { %2365 = vmatpush3.msra.mxu0 %v1001_v45 }
 0xf1c   :  { %2366 = vmatprep.subr.mxu0 %v1000_v50 }
 0xf1d   :  { %2367 = vmatpush3.msra.mxu0 %v1000_v50 }
 0xf9f   :  { %v1569_v39 = vpop.xlane.xlu1 %1568 }
 0xfa0   :  { %v1571_v2 = vmul.f32 0.03125, %v1569_v39  ;;  %v1817_v39 = vld [vmem:[%s3275_s2 + $0x58] sm:$0xff] }
 0xfa1   :  { %v1566_v32 = vpop.xlane.xlu0 %1565  ;;  %2382 = vmatprep.subr.mxu0 %v1817_v39 }
 0xfa2   :  { %v1570_v35 = vmul.f32 0.03125, %v1566_v32  ;;  %v1573_v3 = vsub.f32 %v1563_v61, %v1571_v2  ;;  %v1816_v2 = vld [vmem:[%s3275_s2 + $0x50] sm:$0xff]  ;;  %v1815_v32 = vld [vmem:[%s3275_s2 + $0x48] sm:$0xff] }
 0xfa4   :  { %v1572_v44 = vsub.f32 %v1562_v49, %v1570_v35  ;;  %v1575_v42 = vmul.f32 %v1573_v3, %v1573_v3  ;;  %v1814_v35 = vld [vmem:[%s3275_s2 + $0x40] sm:$0xff] }
 0xfa6   :  { %v1574_v48 = vmul.f32 %v1572_v44, %v1572_v44  ;;  %v1579_v17 = vsel %vm186_vm3, %v1575_v42, 0.0 }
 0xfa8   :  { %v1576_v26 = vsel %vm186_vm3, %v1574_v48, 0.0 }
 0xfa9   :  { %1577 = vadd.xlane.f32.xlu0 %v1576_v26 }
 0xfad   :  { %1580 = vadd.xlane.f32.xlu0 %v1579_v17 }
0x1032   :  { %v1578_v53 = vpop.xlane.xlu0 %1577 }
0x1033   :  { %v1582_v56 = vmul.f32 0.03125, %v1578_v53  ;;  %v1811_v53 = vrot.slane %v3192_v25, %v972_v14 }
0x1035   :  { %v1584_v4 = vadd.f32 1e-05, %v1582_v56 }
0x1036   :  { %v1581_v52 = vpop.xlane.xlu0 %1580 }
0x1037   :  { %2476 = vrsqrt.f32 %v1584_v4  ;;  %v1583_v57 = vmul.f32 0.03125, %v1581_v52 }
0x1039   :  { %v1585_v60 = vadd.f32 1e-05, %v1583_v57  ;;  %v1982_v57 = vld [vmem:[%s3275_s2 + $0x60] ss:$0 sm:$0xff] }
0x103b   :  { %2478 = vrsqrt.f32 %v1585_v60 }
0x1044   :  { %v2477_v7 = vpop.eup %2476 }
0x1045   :  { %v1588_v8 = vmul.f32 %v2477_v7, %v1572_v44 }
0x1047   :  { %v1594_v13 = vmul.f32 %v1593_v6, %v1588_v8 }
0x1048   :  { %v2479_v22 = vpop.eup %2478 }
0x1049   :  { %v1589_v9 = vmul.f32 %v2479_v22, %v1573_v3  ;;  %v1600_v15 = vadd.f32 %v1599_v12, %v1594_v13 }
0x104b   :  { %v1595_v18 = vmul.f32 %v1593_v6, %v1589_v9  ;;  %2368 = vmatprep.mubr.msk.f32.mxu0 %vm186_vm3, %v1600_v15 }
0x104d   :  { %v1601_v19 = vadd.f32 %v1599_v12, %v1595_v18 }
0x104f   :  { %2369 = vmatmul.mubr.msk.f32.vlgmr.msra.gmra.mxu0 %vm186_vm3, %v1601_v19 }
0x1050   :  { %2383 = vmatpush3.msra.mxu0 %v1817_v39 }
0x1051   :  { %2384 = vmatprep.subr.mxu0 %v1816_v2 }
0x1052   :  { %2385 = vmatpush3.msra.mxu0 %v1816_v2 }
0x1053   :  { %2386 = vmatprep.subr.mxu0 %v1815_v32 }
0x1054   :  { %2387 = vmatpush3.msra.mxu0 %v1815_v32 }
0x1055   :  { %2388 = vmatprep.subr.mxu0 %v1814_v35 }
0x1056   :  { %2389 = vmatpush3.msra.mxu0 %v1814_v35 }
0x110f   :  { %v2370_v23 = vpop.f32.mrf.mxu0 }
0x1110   :  { %v1684_v24 = vadd.f32 %v2370_v23, %v1605_v20 }
0x1111   :  { %v1678_v1 = vpop.f32.mrf.mxu0 }
0x1112   :  { %v1679_v30 = vadd.f32 %v1678_v1, %v1605_v20  ;;  %v1688_v27 = vmax.f32 %v1684_v24, 0.0 }
0x1114   :  { %v1687_v51 = vmax.f32 %v1679_v30, 0.0 }
0x1116   :  { %2379 = vmatprep.mubr.msk.f32.mxu1 %vm186_vm3, %v1687_v51 }
0x1117   :  { %2380 = vmatmul.mubr.msk.f32.vlgmr.msra.gmra.mxu1 %vm186_vm3, %v1688_v27 }
0x11d7   :  { %v2381_v21 = vpop.f32.mrf.mxu1 }
0x11d8   :  { %v1771_v29 = vadd.f32 %v2381_v21, %v1692_v28 }
0x11d9   :  { %v1765_v31 = vpop.f32.mrf.mxu1 }
0x11da   :  { %v1766_v36 = vadd.f32 %v1765_v31, %v1692_v28  ;;  %v1775_v37 = vadd.f32 %v1771_v29, %v1601_v19 }
0x11dc   :  { %v1779_v10 = vsel %vm186_vm3, %v1775_v37, 0.0  ;;  %v1774_v38 = vadd.f32 %v1766_v36, %v1600_v15 }
0x11dd   :  { %1780 = vadd.xlane.f32.xlu0 %v1779_v10 }
0x11de   :  { %v1776_v40 = vsel %vm186_vm3, %v1774_v38, 0.0 }
0x11df   :  { %1777 = vadd.xlane.f32.xlu1 %v1776_v40 }
0x1266   :  { %v1781_v43 = vpop.xlane.xlu0 %1780 }
0x1267   :  { %v1783_v46 = vmul.f32 0.03125, %v1781_v43 }
0x1268   :  { %v1778_v54 = vpop.xlane.xlu1 %1777 }
0x1269   :  { %v1785_v58 = vsub.f32 %v1775_v37, %v1783_v46  ;;  %v1782_v59 = vmul.f32 0.03125, %v1778_v54 }
0x126b   :  { %v1784_v61 = vsub.f32 %v1774_v38, %v1782_v59  ;;  %v1787_v62 = vmul.f32 %v1785_v58, %v1785_v58 }
0x126d   :  { %v1791_v16 = vsel %vm186_vm3, %v1787_v62, 0.0  ;;  %v1786_v49 = vmul.f32 %v1784_v61, %v1784_v61 }
0x126e   :  { %1792 = vadd.xlane.f32.xlu0 %v1791_v16 }
0x126f   :  { %v1788_v63 = vsel %vm186_vm3, %v1786_v49, 0.0 }
0x1270   :  { %1789 = vadd.xlane.f32.xlu1 %v1788_v63 }
0x12f7   :  { %v1793_v3 = vpop.xlane.xlu0 %1792 }
0x12f8   :  { %v1795_v44 = vmul.f32 0.03125, %v1793_v3 }
0x12f9   :  { %v1790_v48 = vpop.xlane.xlu1 %1789 }
0x12fa   :  { %v1797_v26 = vadd.f32 1e-05, %v1795_v44  ;;  %v1794_v42 = vmul.f32 0.03125, %v1790_v48 }
0x12fc   :  { %2480 = vrsqrt.f32 %v1797_v26  ;;  %v1796_v17 = vadd.f32 1e-05, %v1794_v42 }
0x12fe   :  { %2482 = vrsqrt.f32 %v1796_v17 }
0x1309   :  { %v2481_v33 = vpop.eup %2480 }
0x130a   :  { %v1801_v45 = vmul.f32 %v2481_v33, %v1785_v58 }
0x130b   :  { %v2483_v50 = vpop.eup %2482 }
0x130c   :  { %v1800_v55 = vmul.f32 %v2483_v50, %v1784_v61  ;;  %v1807_v0 = vmul.f32 %v1805_v5, %v1801_v45 }
0x130e   :  { %v1806_v56 = vmul.f32 %v1805_v5, %v1800_v55  ;;  %v1813_v52 = vadd.f32 %v1811_v53, %v1807_v0 }
0x1310   :  { %v1812_v4 = vadd.f32 %v1811_v53, %v1806_v56 }
0x1312   :  { %2390 = vmatprep.mubr.msk.f32.mxu0 %vm186_vm3, %v1812_v4 }
0x1313   :  { %2391 = vmatmul.mubr.msk.f32.vlgmr.msra.gmra.mxu0 %vm186_vm3, %v1813_v52 }
0x13d3   :  { %v2392_v11 = vpop.f32.mrf.mxu0 }
0x13d4   :  { %v1901_v60 = vadd.f32 %v2392_v11, %v1982_v57 }
0x13d5   :  { %v1895_v6 = vpop.f32.mrf.mxu0 }
0x13d6   :  { %1905 = vst [vmem:[#allocation2 + $0x8] sm:$0xff] %v1901_v60  ;;  %v1896_v47 = vadd.f32 %v1982_v57, %v1895_v6 }
0x13d8   :  { %1904 = vst [vmem:[#allocation2] sm:$0xff] %v1896_v47 }
0x13d9   :  { %2495 = shalt.err (!%p2492_p4)
}
0x13da   :  { %s2514_s21 = smov 128   ;;  %s2515_s0 = smov 8  }
0x13db   :  { %1917 = dma.vmem_to_hbm [thread:$0]  %s1912_s26, 256, %s3276_s3, [#allocation3], %s2514_s21, %s2514_s21, %s2515_s0  }
0x13dc   :  { %2504 = dma.done.wait [#allocation3], 256  }
0x13dd   :  { %2505 = vsyncadd [#allocation3], 4294967040 }
0x13de   :  { %1921 = vsyncpa [#allocation3], 1 }

</bundles_post_ra>
